<compile_context>
chip_gen: v7x
topology: tpu7x:2x2x1
jax: 0.10.0
libtpu: 0.0.40
codegen_flags: <defaults>
</compile_context>

<pallas_src>
import jax
import jax.numpy as jnp
from jax.experimental import pallas as pl
from jax.experimental.pallas import tpu as pltpu


def _round_up(x, m):
    return ((x + m - 1) // m) * m


def _gather_ahead(r, offset, size, axis):
    """result[..., p] = r[..., (p + offset) % size] along `axis`.

    pltpu.roll follows jnp.roll semantics (out[p] = in[(p - shift) % size]),
    so gathering from p+offset is a roll by -offset.  Callers mask every
    position whose true source index is out of range, so wrapped values are
    never observed.
    """
    k = (-offset) % size
    if k == 0:
        return r
    return pltpu.roll(r, k, axis)


def prepare_dcs_params(params, input_channels, output_channels, *,
                       channel_pad=16, compute_dtype=jnp.bfloat16):
    """Packs per-block (w, b) into MXU-friendly stacked weights (done once).

    w: (cout, c0 + i*cout, 3, 3) -> (9*cout_pad, c0_pad + i*cout_pad), rows
       tap-major (tap = ky*3 + kx), columns following the feats-scratch channel
       layout [x (c0, zero-pad to c0_pad), block0 (cout_pad), ...], zero-padded.
    b: (cout,) -> (cout_pad, 1) f32, zero-padded.
    """
    c0, cout = input_channels, output_channels
    c0_pad = _round_up(c0, channel_pad)
    cout_pad = _round_up(cout, channel_pad)
    prepped = []
    for i, (w, b) in enumerate(params):
        cin_i = c0 + i * cout
        k_i = c0_pad + i * cout_pad
        w_t = jnp.transpose(w.astype(jnp.float32), (2, 3, 0, 1)).reshape(
            9, cout, cin_i)
        w_stack = jnp.zeros((9, cout_pad, k_i), jnp.float32)
        w_stack = w_stack.at[:, :cout, :c0].set(w_t[:, :, :c0])
        for j in range(i):
            dst = c0_pad + j * cout_pad
            w_stack = w_stack.at[:, :cout, dst:dst + cout].set(
                w_t[:, :, c0 + j * cout:c0 + (j + 1) * cout])
        w_stack = w_stack.reshape(9 * cout_pad, k_i).astype(compute_dtype)
        b_pad = jnp.zeros((cout_pad, 1), jnp.float32).at[:cout, 0].set(
            b.astype(jnp.float32))
        prepped.append((w_stack, b_pad))
    return prepped


def _make_dcs_kernel(H, W, n, n_pad, dilations, c0, c0_pad, cout, cout_pad,
                     neg_slope, compute_dtype):
    """Fused multi-block DCS kernel for one batch element."""
    num_blocks = len(dilations)

    def kernel(col_ref, x_ref, *refs):
        # refs = (w_0, b_0, ..., w_{nb-1}, b_{nb-1}, o_ref, feats_ref)
        o_ref = refs[2 * num_blocks]
        feats_ref = refs[2 * num_blocks + 1]

        x_f32 = x_ref[0]                               # (c0_pad, n_pad) f32
        o_ref[0, 0:c0, :] = x_f32[:c0]                 # exact pass-through copy
        feats_ref[0:c0_pad, :] = x_f32.astype(compute_dtype)

        flat = jax.lax.broadcasted_iota(jnp.int32, (1, n_pad), 1)
        col = col_ref[...]                             # (1, n_pad) i32 = p % W
        lane_ok = (flat < n) if n_pad != n else None

        def _and(masks):
            m = None
            for x in masks:
                if x is None:
                    continue
                m = x if m is None else (m & x)
            return m

        ch = c0
        for i in range(num_blocks):
            d = dilations[i]
            w_ref = refs[2 * i]
            b_ref = refs[2 * i + 1]
            k_i = c0_pad + i * cout_pad

            # One stacked MXU matmul per block: (9*cout_pad, k_i) @ (k_i, n_pad)
            y = jnp.dot(w_ref[...], feats_ref[0:k_i, :],
                        preferred_element_type=jnp.float32)

            # Hoisted 'same'-padding border masks (depend only on d, dy, dx).
            row_masks = (flat >= d * W, None, flat < (H - d) * W)  # dy=-d,0,+d
            col_masks = (col >= d, None, col < (W - d))            # dx=-d,0,+d

            acc = jnp.zeros((cout_pad, n_pad), jnp.float32)
            for ky in range(3):
                dy = (ky - 1) * d
                for kx in range(3):
                    dx = (kx - 1) * d
                    tap = ky * 3 + kx
                    r = y[tap * cout_pad:(tap + 1) * cout_pad, :]
                    # out[:, p] needs (W_tap @ feats)[:, p + dy*W + dx]
                    r = _gather_ahead(r, dy * W + dx, n_pad, 1)
                    ok = _and([lane_ok, row_masks[ky], col_masks[kx]])
                    acc = acc + (r if ok is None else jnp.where(ok, r, 0.0))

            acc = acc + b_ref[...]                             # (cout_pad, 1)
            acc = jnp.where(acc >= 0, acc, neg_slope * acc)    # LeakyReLU(0.01)
            o_ref[0, ch:ch + cout, :] = acc[:cout].astype(o_ref.dtype)
            base = c0_pad + i * cout_pad
            feats_ref[base:base + cout_pad, :] = acc.astype(compute_dtype)
            ch += cout

    return kernel


def dcs_forward(x_nchw, params, dilations, output_channels, *,
                neg_slope=0.01, compute_dtype=jnp.bfloat16, channel_pad=16,
                prepped_params=None, interpret=False):
    """x_nchw: (B, C0, H, W) -> (B, C0 + len(dilations)*output_channels, H, W)."""
    B, c0, H, W = x_nchw.shape
    cout = output_channels
    num_blocks = len(dilations)
    ctotal = c0 + num_blocks * cout
    n = H * W
    n_pad = _round_up(n, 128)
    c0_pad = _round_up(c0, channel_pad)
    cout_pad = _round_up(cout, channel_pad)

    if prepped_params is None:
        prepped_params = prepare_dcs_params(
            params, c0, cout, channel_pad=channel_pad,
            compute_dtype=compute_dtype)

    # Flatten spatial dims onto the lane axis; pad channels / lanes to tile
    # boundaries (no-op for production shapes: c0=128, n % 128 == 0).
    x_flat = x_nchw.astype(jnp.float32).reshape(B, c0, n)
    if c0_pad != c0 or n_pad != n:
        x_flat = jnp.pad(x_flat, ((0, 0), (0, c0_pad - c0), (0, n_pad - n)))

    col_ids = (jnp.arange(n_pad, dtype=jnp.int32) % W).reshape(1, n_pad)

    inputs = [col_ids, x_flat]
    in_specs = [pl.BlockSpec((1, n_pad), lambda b: (0, 0)),
                pl.BlockSpec((1, c0_pad, n_pad), lambda b: (b, 0, 0))]
    for i, (w_stack, b_pad) in enumerate(prepped_params):
        k_i = c0_pad + i * cout_pad
        inputs.append(w_stack)
        in_specs.append(pl.BlockSpec((9 * cout_pad, k_i), lambda b: (0, 0)))
        inputs.append(b_pad)
        in_specs.append(pl.BlockSpec((cout_pad, 1), lambda b: (0, 0)))

    kernel = _make_dcs_kernel(H, W, n, n_pad, tuple(dilations), c0, c0_pad,
                              cout, cout_pad, neg_slope, compute_dtype)

    feats_rows = c0_pad + num_blocks * cout_pad
    item = jnp.dtype(compute_dtype).itemsize

    # Explicit VMEM budget (default scoped limit is only 16/32 MiB).
    vmem_bytes = (2 * c0_pad * n_pad * 4                  # input double buffer
                  + 2 * ctotal * n_pad * 4                # output double buffer
                  + 2 * sum(int(w.size) * w.dtype.itemsize + int(b.size) * 4
                            for w, b in prepped_params)   # weights / biases
                  + feats_rows * n_pad * item             # feats scratch
                  + (9 + 6) * cout_pad * n_pad * 4)       # matmul result + temps
    vmem_limit = int(min(max(int(vmem_bytes * 1.5) + (2 << 20), 32 << 20),
                         100 << 20))

    flops = 2 * B * n_pad * 9 * cout_pad * sum(
        c0_pad + i * cout_pad for i in range(num_blocks))
    bytes_accessed = (int(x_flat.size) * 4 + B * ctotal * n_pad * 4
                      + sum(int(w.size) * w.dtype.itemsize + int(b.size) * 4
                            for w, b in prepped_params))

    out_flat = pl.pallas_call(
        kernel,
        out_shape=jax.ShapeDtypeStruct((B, ctotal, n_pad), jnp.float32),
        grid_spec=pltpu.PrefetchScalarGridSpec(
            num_scalar_prefetch=0,
            grid=(B,),
            in_specs=in_specs,
            out_specs=pl.BlockSpec((1, ctotal, n_pad), lambda b: (b, 0, 0)),
            scratch_shapes=[pltpu.VMEM((feats_rows, n_pad), compute_dtype)],
        ),
        compiler_params=pltpu.CompilerParams(
            dimension_semantics=("parallel",),
            vmem_limit_bytes=vmem_limit),
        cost_estimate=pl.CostEstimate(flops=int(flops), transcendentals=0,
                                      bytes_accessed=int(bytes_accessed)),
        interpret=interpret,
    )(*inputs)

    if n_pad != n:
        out_flat = out_flat[..., :n]
    return out_flat.reshape(B, ctotal, H, W)


class DCSMultiLayResolution:
    """JAX/Pallas port of the PyTorch DCS_multi_lay_resolution module."""

    def __init__(self, input_channels=128, output_channels=10, num_blocks=3,
                 dilations=(3, 6, 9), kernel_size=3, mode="concat", seed=0,
                 compute_dtype=jnp.bfloat16, channel_pad=16):
        assert num_blocks == len(dilations)
        assert kernel_size == 3
        # TODO(synk): the reference module only defines behaviour for 'concat'.
        assert mode == "concat"
        self.num_blocks = num_blocks
        self.dilations = list(dilations)
        self.input_channels = input_channels
        self.output_channels = output_channels
        self.compute_dtype = compute_dtype
        self.channel_pad = channel_pad
        self.params = []
        key = jax.random.PRNGKey(seed)
        for i in range(num_blocks):
            cin = input_channels + i * output_channels
            key, kw, kb = jax.random.split(key, 3)
            # deterministic PyTorch-like uniform(-1/sqrt(fan_in), 1/sqrt(fan_in))
            fan_in = cin * kernel_size * kernel_size
            bound = 1.0 / float(fan_in) ** 0.5
            w = jax.random.uniform(kw, (output_channels, cin, 3, 3),
                                   jnp.float32, -bound, bound)
            b = jax.random.uniform(kb, (output_channels,), jnp.float32,
                                   -bound, bound)
            self.params.append((w, b))
        # Weight packing done once here (not on every forward call).
        self._prepped = prepare_dcs_params(
            self.params, input_channels, output_channels,
            channel_pad=channel_pad, compute_dtype=compute_dtype)

    def __call__(self, xs_nchw):
        """(B, In_chn, Fbin, Tdim) -> (B, In_chn + num_blocks*out_chn, Fbin, Tdim)."""
        return dcs_forward(xs_nchw, self.params, self.dilations,
                           self.output_channels,
                           compute_dtype=self.compute_dtype,
                           channel_pad=self.channel_pad,
                           prepped_params=self._prepped)


# ----------------------------------------------------------------------------
# Pure-JAX reference (lax conv) for a correctness sanity check.
# ----------------------------------------------------------------------------
def _reference_forward(module, xs_nchw):
    x = xs_nchw.astype(jnp.float32)
    pred = [x]
    for i in range(module.num_blocks):
        inp = jnp.concatenate(pred, axis=1)
        w, b = module.params[i]
        d = module.dilations[i]
        y = jax.lax.conv_general_dilated(
            inp, w, window_strides=(1, 1), padding="SAME",
            rhs_dilation=(d, d),
            dimension_numbers=("NCHW", "OIHW", "NCHW"),
            precision=jax.lax.Precision.HIGHEST)
        y = y + b[None, :, None, None]
        y = jnp.where(y >= 0, y, 0.01 * y)
        pred.append(y)
    return jnp.concatenate(pred, axis=1)


if __name__ == "__main__":
    B, C_in, H, W = 2, 4, 16, 16
    out_ch, n_blocks = 3, 3
    dilations = [3, 6, 9]

    key = jax.random.PRNGKey(0)
    xs = jax.random.normal(key, (B, C_in, H, W), jnp.float32)

    module = DCSMultiLayResolution(input_channels=C_in, output_channels=out_ch,
                                   num_blocks=n_blocks, dilations=dilations,
                                   kernel_size=3, mode="concat", seed=0)

    out = jax.block_until_ready(module(xs))
    expected_shape = (B, C_in + n_blocks * out_ch, H, W)
    assert out.shape == expected_shape, (out.shape, expected_shape)

    ref = jax.block_until_ready(_reference_forward(module, xs))

    # Pass-through channels are bit-exact copies of the input.
    assert bool(jnp.array_equal(out[:, :C_in], xs))

    # Default bf16-matmul path: loose tolerance.
    err = float(jnp.max(jnp.abs(out - ref)))
    assert jnp.allclose(out, ref, atol=5e-2, rtol=5e-2), err

    # f32-matmul path: tighter tolerance.
    out32 = jax.block_until_ready(
        dcs_forward(xs, module.params, dilations, out_ch,
                    compute_dtype=jnp.float32))
    err32 = float(jnp.max(jnp.abs(out32 - ref)))
    assert jnp.allclose(out32, ref, atol=1e-2, rtol=1e-2), err32

    print("KERNEL_OK")
</pallas_src>

<mosaic_0001>
module attributes {stable_mosaic.version = 11 : i64} {
  func.func @kernel(%arg0: i32, %arg1: memref<1x256xi32, #tpu.memory_space<vmem>>, %arg2: memref<1x16x256xf32, #tpu.memory_space<vmem>>, %arg3: memref<144x16xbf16, #tpu.memory_space<vmem>>, %arg4: memref<16x1xf32, #tpu.memory_space<vmem>>, %arg5: memref<144x32xbf16, #tpu.memory_space<vmem>>, %arg6: memref<16x1xf32, #tpu.memory_space<vmem>>, %arg7: memref<144x48xbf16, #tpu.memory_space<vmem>>, %arg8: memref<16x1xf32, #tpu.memory_space<vmem>>, %arg9: memref<1x13x256xf32, #tpu.memory_space<vmem>>, %arg10: memref<64x256xbf16, #tpu.memory_space<vmem>>) attributes {dimension_semantics = [#tpu.dimension_semantics<parallel>], iteration_bounds = array<i64: 2>, scalar_prefetch = 0 : i64, scratch_operands = 1 : i64, tpu.core_type = #tpu.core_type<tc>, window_params = [{pipeline_mode = #tpu.pipeline_mode<synchronous>, transform_indices = @transform_0, window_bounds = array<i64: 1, 256>}, {transform_indices = @transform_1, window_bounds = array<i64: 1, 16, 256>}, {pipeline_mode = #tpu.pipeline_mode<synchronous>, transform_indices = @transform_2, window_bounds = array<i64: 144, 16>}, {pipeline_mode = #tpu.pipeline_mode<synchronous>, transform_indices = @transform_3, window_bounds = array<i64: 16, 1>}, {pipeline_mode = #tpu.pipeline_mode<synchronous>, transform_indices = @transform_4, window_bounds = array<i64: 144, 32>}, {pipeline_mode = #tpu.pipeline_mode<synchronous>, transform_indices = @transform_5, window_bounds = array<i64: 16, 1>}, {pipeline_mode = #tpu.pipeline_mode<synchronous>, transform_indices = @transform_6, window_bounds = array<i64: 144, 48>}, {pipeline_mode = #tpu.pipeline_mode<synchronous>, transform_indices = @transform_7, window_bounds = array<i64: 16, 1>}, {transform_indices = @transform_8, window_bounds = array<i64: 1, 13, 256>}]} {
    %c0 = arith.constant 0 : index
    %c0_0 = arith.constant 0 : index
    %c0_1 = arith.constant 0 : index
    %0 = vector.load %arg2[%c0, %c0_0, %c0_1] : memref<1x16x256xf32, #tpu.memory_space<vmem>>, vector<1x16x256xf32>
    %1 = vector.shape_cast %0 : vector<1x16x256xf32> to vector<16x256xf32>
    %2 = vector.extract_strided_slice %1 {offsets = [0, 0], sizes = [4, 256], strides = [1, 1]} : vector<16x256xf32> to vector<4x256xf32>
    %c0_2 = arith.constant 0 : index
    %c0_3 = arith.constant 0 : index
    %c0_4 = arith.constant 0 : index
    %3 = vector.load %arg9[%c0_2, %c0_3, %c0_4] : memref<1x13x256xf32, #tpu.memory_space<vmem>>, vector<1x4x256xf32>
    %4 = vector.shape_cast %3 : vector<1x4x256xf32> to vector<4x256xf32>
    %5 = vector.shape_cast %2 : vector<4x256xf32> to vector<1x4x256xf32>
    tpu.vector_store %arg9[%c0_2, %c0_3, %c0_4], %5 {strides = array<i32>} : memref<1x13x256xf32, #tpu.memory_space<vmem>>, vector<1x4x256xf32>,
    %6 = arith.truncf %1 : vector<16x256xf32> to vector<16x256xbf16>
    %c0_5 = arith.constant 0 : index
    %c0_6 = arith.constant 0 : index
    %7 = vector.load %arg10[%c0_5, %c0_6] : memref<64x256xbf16, #tpu.memory_space<vmem>>, vector<16x256xbf16>
    tpu.vector_store %arg10[%c0_5, %c0_6], %6 {strides = array<i32>} : memref<64x256xbf16, #tpu.memory_space<vmem>>, vector<16x256xbf16>,
    %8 = tpu.iota {dimensions = array<i32: 1>} : vector<1x256xi32>
    %c0_7 = arith.constant 0 : index
    %c0_8 = arith.constant 0 : index
    %9 = vector.load %arg1[%c0_7, %c0_8] : memref<1x256xi32, #tpu.memory_space<vmem>>, vector<1x256xi32>
    %c0_9 = arith.constant 0 : index
    %c0_10 = arith.constant 0 : index
    %10 = vector.load %arg3[%c0_9, %c0_10] : memref<144x16xbf16, #tpu.memory_space<vmem>>, vector<144x16xbf16>
    %c0_11 = arith.constant 0 : index
    %c0_12 = arith.constant 0 : index
    %11 = vector.load %arg10[%c0_11, %c0_12] : memref<64x256xbf16, #tpu.memory_space<vmem>>, vector<16x256xbf16>
    %cst = arith.constant dense<0.000000e+00> : vector<144x256xf32>
    %12 = tpu.matmul %10, %11, %cst {dimension_numbers = #tpu.dot_dimension_numbers<[1], [0], [0], [1], [0, 0, 1, 1], [], []>} : vector<144x16xbf16>, vector<16x256xbf16>, vector<144x256xf32> -> vector<144x256xf32>
    %c48_i32 = arith.constant 48 : i32
    %13 = vector.broadcast %c48_i32 : i32 to vector<1x256xi32>
    %14 = arith.cmpi sge, %8, %13 : vector<1x256xi32>
    %c208_i32 = arith.constant 208 : i32
    %15 = vector.broadcast %c208_i32 : i32 to vector<1x256xi32>
    %16 = arith.cmpi slt, %8, %15 : vector<1x256xi32>
    %c3_i32 = arith.constant 3 : i32
    %17 = vector.broadcast %c3_i32 : i32 to vector<1x256xi32>
    %18 = arith.cmpi sge, %9, %17 : vector<1x256xi32>
    %c13_i32 = arith.constant 13 : i32
    %19 = vector.broadcast %c13_i32 : i32 to vector<1x256xi32>
    %20 = arith.cmpi slt, %9, %19 : vector<1x256xi32>
    %cst_13 = arith.constant 0.000000e+00 : f32
    %21 = vector.broadcast %cst_13 : f32 to vector<16x256xf32>
    %22 = vector.extract_strided_slice %12 {offsets = [0, 0], sizes = [16, 256], strides = [1, 1]} : vector<144x256xf32> to vector<16x256xf32>
    %c51_i32 = arith.constant 51 : i32
    %23 = tpu.dynamic_rotate %22 by %c51_i32 dim 1 : vector<16x256xf32>, i32 -> vector<16x256xf32>
    %24 = arith.andi %14, %18 : vector<1x256xi1>
    %cst_14 = arith.constant 0.000000e+00 : f32
    %25 = vector.shape_cast %24 : vector<1x256xi1> to vector<1x256xi1>
    %26 = vector.broadcast %25 : vector<1x256xi1> to vector<16x256xi1>
    %27 = vector.broadcast %cst_14 : f32 to vector<16x256xf32>
    %28 = arith.select %26, %23, %27 : vector<16x256xi1>, vector<16x256xf32>
    %29 = arith.addf %21, %28 : vector<16x256xf32>
    %30 = vector.extract_strided_slice %12 {offsets = [16, 0], sizes = [16, 256], strides = [1, 1]} : vector<144x256xf32> to vector<16x256xf32>
    %c48_i32_15 = arith.constant 48 : i32
    %31 = tpu.dynamic_rotate %30 by %c48_i32_15 dim 1 : vector<16x256xf32>, i32 -> vector<16x256xf32>
    %cst_16 = arith.constant 0.000000e+00 : f32
    %32 = vector.shape_cast %14 : vector<1x256xi1> to vector<1x256xi1>
    %33 = vector.broadcast %32 : vector<1x256xi1> to vector<16x256xi1>
    %34 = vector.broadcast %cst_16 : f32 to vector<16x256xf32>
    %35 = arith.select %33, %31, %34 : vector<16x256xi1>, vector<16x256xf32>
    %36 = arith.addf %29, %35 : vector<16x256xf32>
    %37 = vector.extract_strided_slice %12 {offsets = [32, 0], sizes = [16, 256], strides = [1, 1]} : vector<144x256xf32> to vector<16x256xf32>
    %c45_i32 = arith.constant 45 : i32
    %38 = tpu.dynamic_rotate %37 by %c45_i32 dim 1 : vector<16x256xf32>, i32 -> vector<16x256xf32>
    %39 = arith.andi %14, %20 : vector<1x256xi1>
    %cst_17 = arith.constant 0.000000e+00 : f32
    %40 = vector.shape_cast %39 : vector<1x256xi1> to vector<1x256xi1>
    %41 = vector.broadcast %40 : vector<1x256xi1> to vector<16x256xi1>
    %42 = vector.broadcast %cst_17 : f32 to vector<16x256xf32>
    %43 = arith.select %41, %38, %42 : vector<16x256xi1>, vector<16x256xf32>
    %44 = arith.addf %36, %43 : vector<16x256xf32>
    %45 = vector.extract_strided_slice %12 {offsets = [48, 0], sizes = [16, 256], strides = [1, 1]} : vector<144x256xf32> to vector<16x256xf32>
    %c3_i32_18 = arith.constant 3 : i32
    %46 = tpu.dynamic_rotate %45 by %c3_i32_18 dim 1 : vector<16x256xf32>, i32 -> vector<16x256xf32>
    %cst_19 = arith.constant 0.000000e+00 : f32
    %47 = vector.shape_cast %18 : vector<1x256xi1> to vector<1x256xi1>
    %48 = vector.broadcast %47 : vector<1x256xi1> to vector<16x256xi1>
    %49 = vector.broadcast %cst_19 : f32 to vector<16x256xf32>
    %50 = arith.select %48, %46, %49 : vector<16x256xi1>, vector<16x256xf32>
    %51 = arith.addf %44, %50 : vector<16x256xf32>
    %52 = vector.extract_strided_slice %12 {offsets = [64, 0], sizes = [16, 256], strides = [1, 1]} : vector<144x256xf32> to vector<16x256xf32>
    %53 = arith.addf %51, %52 : vector<16x256xf32>
    %54 = vector.extract_strided_slice %12 {offsets = [80, 0], sizes = [16, 256], strides = [1, 1]} : vector<144x256xf32> to vector<16x256xf32>
    %c253_i32 = arith.constant 253 : i32
    %55 = tpu.dynamic_rotate %54 by %c253_i32 dim 1 : vector<16x256xf32>, i32 -> vector<16x256xf32>
    %cst_20 = arith.constant 0.000000e+00 : f32
    %56 = vector.shape_cast %20 : vector<1x256xi1> to vector<1x256xi1>
    %57 = vector.broadcast %56 : vector<1x256xi1> to vector<16x256xi1>
    %58 = vector.broadcast %cst_20 : f32 to vector<16x256xf32>
    %59 = arith.select %57, %55, %58 : vector<16x256xi1>, vector<16x256xf32>
    %60 = arith.addf %53, %59 : vector<16x256xf32>
    %61 = vector.extract_strided_slice %12 {offsets = [96, 0], sizes = [16, 256], strides = [1, 1]} : vector<144x256xf32> to vector<16x256xf32>
    %c211_i32 = arith.constant 211 : i32
    %62 = tpu.dynamic_rotate %61 by %c211_i32 dim 1 : vector<16x256xf32>, i32 -> vector<16x256xf32>
    %63 = arith.andi %16, %18 : vector<1x256xi1>
    %cst_21 = arith.constant 0.000000e+00 : f32
    %64 = vector.shape_cast %63 : vector<1x256xi1> to vector<1x256xi1>
    %65 = vector.broadcast %64 : vector<1x256xi1> to vector<16x256xi1>
    %66 = vector.broadcast %cst_21 : f32 to vector<16x256xf32>
    %67 = arith.select %65, %62, %66 : vector<16x256xi1>, vector<16x256xf32>
    %68 = arith.addf %60, %67 : vector<16x256xf32>
    %69 = vector.extract_strided_slice %12 {offsets = [112, 0], sizes = [16, 256], strides = [1, 1]} : vector<144x256xf32> to vector<16x256xf32>
    %c208_i32_22 = arith.constant 208 : i32
    %70 = tpu.dynamic_rotate %69 by %c208_i32_22 dim 1 : vector<16x256xf32>, i32 -> vector<16x256xf32>
    %cst_23 = arith.constant 0.000000e+00 : f32
    %71 = vector.shape_cast %16 : vector<1x256xi1> to vector<1x256xi1>
    %72 = vector.broadcast %71 : vector<1x256xi1> to vector<16x256xi1>
    %73 = vector.broadcast %cst_23 : f32 to vector<16x256xf32>
    %74 = arith.select %72, %70, %73 : vector<16x256xi1>, vector<16x256xf32>
    %75 = arith.addf %68, %74 : vector<16x256xf32>
    %76 = vector.extract_strided_slice %12 {offsets = [128, 0], sizes = [16, 256], strides = [1, 1]} : vector<144x256xf32> to vector<16x256xf32>
    %c205_i32 = arith.constant 205 : i32
    %77 = tpu.dynamic_rotate %76 by %c205_i32 dim 1 : vector<16x256xf32>, i32 -> vector<16x256xf32>
    %78 = arith.andi %16, %20 : vector<1x256xi1>
    %cst_24 = arith.constant 0.000000e+00 : f32
    %79 = vector.shape_cast %78 : vector<1x256xi1> to vector<1x256xi1>
    %80 = vector.broadcast %79 : vector<1x256xi1> to vector<16x256xi1>
    %81 = vector.broadcast %cst_24 : f32 to vector<16x256xf32>
    %82 = arith.select %80, %77, %81 : vector<16x256xi1>, vector<16x256xf32>
    %83 = arith.addf %75, %82 : vector<16x256xf32>
    %c0_25 = arith.constant 0 : index
    %c0_26 = arith.constant 0 : index
    %84 = vector.load %arg4[%c0_25, %c0_26] : memref<16x1xf32, #tpu.memory_space<vmem>>, vector<16x1xf32>
    %85 = vector.broadcast %84 : vector<16x1xf32> to vector<16x256xf32>
    %86 = arith.addf %83, %85 : vector<16x256xf32>
    %cst_27 = arith.constant 0.000000e+00 : f32
    %87 = vector.broadcast %cst_27 : f32 to vector<16x256xf32>
    %88 = arith.cmpf oge, %86, %87 : vector<16x256xf32>
    %cst_28 = arith.constant 0.00999999977 : f32
    %89 = vector.broadcast %cst_28 : f32 to vector<16x256xf32>
    %90 = arith.mulf %89, %86 : vector<16x256xf32>
    %91 = arith.select %88, %86, %90 : vector<16x256xi1>, vector<16x256xf32>
    %92 = vector.extract_strided_slice %91 {offsets = [0, 0], sizes = [3, 256], strides = [1, 1]} : vector<16x256xf32> to vector<3x256xf32>
    %c0_29 = arith.constant 0 : index
    %c4 = arith.constant 4 : index
    %c0_30 = arith.constant 0 : index
    %93 = vector.load %arg9[%c0_29, %c4, %c0_30] : memref<1x13x256xf32, #tpu.memory_space<vmem>>, vector<1x3x256xf32>
    %94 = vector.shape_cast %93 : vector<1x3x256xf32> to vector<3x256xf32>
    %95 = vector.shape_cast %92 : vector<3x256xf32> to vector<1x3x256xf32>
    tpu.vector_store %arg9[%c0_29, %c4, %c0_30], %95 {strides = array<i32>} : memref<1x13x256xf32, #tpu.memory_space<vmem>>, vector<1x3x256xf32>,
    %96 = arith.truncf %91 : vector<16x256xf32> to vector<16x256xbf16>
    %c16 = arith.constant 16 : index
    %c0_31 = arith.constant 0 : index
    %97 = vector.load %arg10[%c16, %c0_31] : memref<64x256xbf16, #tpu.memory_space<vmem>>, vector<16x256xbf16>
    tpu.vector_store %arg10[%c16, %c0_31], %96 {strides = array<i32>} : memref<64x256xbf16, #tpu.memory_space<vmem>>, vector<16x256xbf16>,
    %c0_32 = arith.constant 0 : index
    %c0_33 = arith.constant 0 : index
    %98 = vector.load %arg5[%c0_32, %c0_33] : memref<144x32xbf16, #tpu.memory_space<vmem>>, vector<144x32xbf16>
    %c0_34 = arith.constant 0 : index
    %c0_35 = arith.constant 0 : index
    %99 = vector.load %arg10[%c0_34, %c0_35] : memref<64x256xbf16, #tpu.memory_space<vmem>>, vector<32x256xbf16>
    %cst_36 = arith.constant dense<0.000000e+00> : vector<144x256xf32>
    %100 = tpu.matmul %98, %99, %cst_36 {dimension_numbers = #tpu.dot_dimension_numbers<[1], [0], [0], [1], [0, 0, 1, 1], [], []>} : vector<144x32xbf16>, vector<32x256xbf16>, vector<144x256xf32> -> vector<144x256xf32>
    %c96_i32 = arith.constant 96 : i32
    %101 = vector.broadcast %c96_i32 : i32 to vector<1x256xi32>
    %102 = arith.cmpi sge, %8, %101 : vector<1x256xi32>
    %c160_i32 = arith.constant 160 : i32
    %103 = vector.broadcast %c160_i32 : i32 to vector<1x256xi32>
    %104 = arith.cmpi slt, %8, %103 : vector<1x256xi32>
    %c6_i32 = arith.constant 6 : i32
    %105 = vector.broadcast %c6_i32 : i32 to vector<1x256xi32>
    %106 = arith.cmpi sge, %9, %105 : vector<1x256xi32>
    %c10_i32 = arith.constant 10 : i32
    %107 = vector.broadcast %c10_i32 : i32 to vector<1x256xi32>
    %108 = arith.cmpi slt, %9, %107 : vector<1x256xi32>
    %cst_37 = arith.constant 0.000000e+00 : f32
    %109 = vector.broadcast %cst_37 : f32 to vector<16x256xf32>
    %110 = vector.extract_strided_slice %100 {offsets = [0, 0], sizes = [16, 256], strides = [1, 1]} : vector<144x256xf32> to vector<16x256xf32>
    %c102_i32 = arith.constant 102 : i32
    %111 = tpu.dynamic_rotate %110 by %c102_i32 dim 1 : vector<16x256xf32>, i32 -> vector<16x256xf32>
    %112 = arith.andi %102, %106 : vector<1x256xi1>
    %cst_38 = arith.constant 0.000000e+00 : f32
    %113 = vector.shape_cast %112 : vector<1x256xi1> to vector<1x256xi1>
    %114 = vector.broadcast %113 : vector<1x256xi1> to vector<16x256xi1>
    %115 = vector.broadcast %cst_38 : f32 to vector<16x256xf32>
    %116 = arith.select %114, %111, %115 : vector<16x256xi1>, vector<16x256xf32>
    %117 = arith.addf %109, %116 : vector<16x256xf32>
    %118 = vector.extract_strided_slice %100 {offsets = [16, 0], sizes = [16, 256], strides = [1, 1]} : vector<144x256xf32> to vector<16x256xf32>
    %c96_i32_39 = arith.constant 96 : i32
    %119 = tpu.dynamic_rotate %118 by %c96_i32_39 dim 1 : vector<16x256xf32>, i32 -> vector<16x256xf32>
    %cst_40 = arith.constant 0.000000e+00 : f32
    %120 = vector.shape_cast %102 : vector<1x256xi1> to vector<1x256xi1>
    %121 = vector.broadcast %120 : vector<1x256xi1> to vector<16x256xi1>
    %122 = vector.broadcast %cst_40 : f32 to vector<16x256xf32>
    %123 = arith.select %121, %119, %122 : vector<16x256xi1>, vector<16x256xf32>
    %124 = arith.addf %117, %123 : vector<16x256xf32>
    %125 = vector.extract_strided_slice %100 {offsets = [32, 0], sizes = [16, 256], strides = [1, 1]} : vector<144x256xf32> to vector<16x256xf32>
    %c90_i32 = arith.constant 90 : i32
    %126 = tpu.dynamic_rotate %125 by %c90_i32 dim 1 : vector<16x256xf32>, i32 -> vector<16x256xf32>
    %127 = arith.andi %102, %108 : vector<1x256xi1>
    %cst_41 = arith.constant 0.000000e+00 : f32
    %128 = vector.shape_cast %127 : vector<1x256xi1> to vector<1x256xi1>
    %129 = vector.broadcast %128 : vector<1x256xi1> to vector<16x256xi1>
    %130 = vector.broadcast %cst_41 : f32 to vector<16x256xf32>
    %131 = arith.select %129, %126, %130 : vector<16x256xi1>, vector<16x256xf32>
    %132 = arith.addf %124, %131 : vector<16x256xf32>
    %133 = vector.extract_strided_slice %100 {offsets = [48, 0], sizes = [16, 256], strides = [1, 1]} : vector<144x256xf32> to vector<16x256xf32>
    %c6_i32_42 = arith.constant 6 : i32
    %134 = tpu.dynamic_rotate %133 by %c6_i32_42 dim 1 : vector<16x256xf32>, i32 -> vector<16x256xf32>
    %cst_43 = arith.constant 0.000000e+00 : f32
    %135 = vector.shape_cast %106 : vector<1x256xi1> to vector<1x256xi1>
    %136 = vector.broadcast %135 : vector<1x256xi1> to vector<16x256xi1>
    %137 = vector.broadcast %cst_43 : f32 to vector<16x256xf32>
    %138 = arith.select %136, %134, %137 : vector<16x256xi1>, vector<16x256xf32>
    %139 = arith.addf %132, %138 : vector<16x256xf32>
    %140 = vector.extract_strided_slice %100 {offsets = [64, 0], sizes = [16, 256], strides = [1, 1]} : vector<144x256xf32> to vector<16x256xf32>
    %141 = arith.addf %139, %140 : vector<16x256xf32>
    %142 = vector.extract_strided_slice %100 {offsets = [80, 0], sizes = [16, 256], strides = [1, 1]} : vector<144x256xf32> to vector<16x256xf32>
    %c250_i32 = arith.constant 250 : i32
    %143 = tpu.dynamic_rotate %142 by %c250_i32 dim 1 : vector<16x256xf32>, i32 -> vector<16x256xf32>
    %cst_44 = arith.constant 0.000000e+00 : f32
    %144 = vector.shape_cast %108 : vector<1x256xi1> to vector<1x256xi1>
    %145 = vector.broadcast %144 : vector<1x256xi1> to vector<16x256xi1>
    %146 = vector.broadcast %cst_44 : f32 to vector<16x256xf32>
    %147 = arith.select %145, %143, %146 : vector<16x256xi1>, vector<16x256xf32>
    %148 = arith.addf %141, %147 : vector<16x256xf32>
    %149 = vector.extract_strided_slice %100 {offsets = [96, 0], sizes = [16, 256], strides = [1, 1]} : vector<144x256xf32> to vector<16x256xf32>
    %c166_i32 = arith.constant 166 : i32
    %150 = tpu.dynamic_rotate %149 by %c166_i32 dim 1 : vector<16x256xf32>, i32 -> vector<16x256xf32>
    %151 = arith.andi %104, %106 : vector<1x256xi1>
    %cst_45 = arith.constant 0.000000e+00 : f32
    %152 = vector.shape_cast %151 : vector<1x256xi1> to vector<1x256xi1>
    %153 = vector.broadcast %152 : vector<1x256xi1> to vector<16x256xi1>
    %154 = vector.broadcast %cst_45 : f32 to vector<16x256xf32>
    %155 = arith.select %153, %150, %154 : vector<16x256xi1>, vector<16x256xf32>
    %156 = arith.addf %148, %155 : vector<16x256xf32>
    %157 = vector.extract_strided_slice %100 {offsets = [112, 0], sizes = [16, 256], strides = [1, 1]} : vector<144x256xf32> to vector<16x256xf32>
    %c160_i32_46 = arith.constant 160 : i32
    %158 = tpu.dynamic_rotate %157 by %c160_i32_46 dim 1 : vector<16x256xf32>, i32 -> vector<16x256xf32>
    %cst_47 = arith.constant 0.000000e+00 : f32
    %159 = vector.shape_cast %104 : vector<1x256xi1> to vector<1x256xi1>
    %160 = vector.broadcast %159 : vector<1x256xi1> to vector<16x256xi1>
    %161 = vector.broadcast %cst_47 : f32 to vector<16x256xf32>
    %162 = arith.select %160, %158, %161 : vector<16x256xi1>, vector<16x256xf32>
    %163 = arith.addf %156, %162 : vector<16x256xf32>
    %164 = vector.extract_strided_slice %100 {offsets = [128, 0], sizes = [16, 256], strides = [1, 1]} : vector<144x256xf32> to vector<16x256xf32>
    %c154_i32 = arith.constant 154 : i32
    %165 = tpu.dynamic_rotate %164 by %c154_i32 dim 1 : vector<16x256xf32>, i32 -> vector<16x256xf32>
    %166 = arith.andi %104, %108 : vector<1x256xi1>
    %cst_48 = arith.constant 0.000000e+00 : f32
    %167 = vector.shape_cast %166 : vector<1x256xi1> to vector<1x256xi1>
    %168 = vector.broadcast %167 : vector<1x256xi1> to vector<16x256xi1>
    %169 = vector.broadcast %cst_48 : f32 to vector<16x256xf32>
    %170 = arith.select %168, %165, %169 : vector<16x256xi1>, vector<16x256xf32>
    %171 = arith.addf %163, %170 : vector<16x256xf32>
    %c0_49 = arith.constant 0 : index
    %c0_50 = arith.constant 0 : index
    %172 = vector.load %arg6[%c0_49, %c0_50] : memref<16x1xf32, #tpu.memory_space<vmem>>, vector<16x1xf32>
    %173 = vector.broadcast %172 : vector<16x1xf32> to vector<16x256xf32>
    %174 = arith.addf %171, %173 : vector<16x256xf32>
    %cst_51 = arith.constant 0.000000e+00 : f32
    %175 = vector.broadcast %cst_51 : f32 to vector<16x256xf32>
    %176 = arith.cmpf oge, %174, %175 : vector<16x256xf32>
    %cst_52 = arith.constant 0.00999999977 : f32
    %177 = vector.broadcast %cst_52 : f32 to vector<16x256xf32>
    %178 = arith.mulf %177, %174 : vector<16x256xf32>
    %179 = arith.select %176, %174, %178 : vector<16x256xi1>, vector<16x256xf32>
    %180 = vector.extract_strided_slice %179 {offsets = [0, 0], sizes = [3, 256], strides = [1, 1]} : vector<16x256xf32> to vector<3x256xf32>
    %c0_53 = arith.constant 0 : index
    %c7 = arith.constant 7 : index
    %c0_54 = arith.constant 0 : index
    %181 = vector.load %arg9[%c0_53, %c7, %c0_54] : memref<1x13x256xf32, #tpu.memory_space<vmem>>, vector<1x3x256xf32>
    %182 = vector.shape_cast %181 : vector<1x3x256xf32> to vector<3x256xf32>
    %183 = vector.shape_cast %180 : vector<3x256xf32> to vector<1x3x256xf32>
    tpu.vector_store %arg9[%c0_53, %c7, %c0_54], %183 {strides = array<i32>} : memref<1x13x256xf32, #tpu.memory_space<vmem>>, vector<1x3x256xf32>,
    %184 = arith.truncf %179 : vector<16x256xf32> to vector<16x256xbf16>
    %c32 = arith.constant 32 : index
    %c0_55 = arith.constant 0 : index
    %185 = vector.load %arg10[%c32, %c0_55] : memref<64x256xbf16, #tpu.memory_space<vmem>>, vector<16x256xbf16>
    tpu.vector_store %arg10[%c32, %c0_55], %184 {strides = array<i32>} : memref<64x256xbf16, #tpu.memory_space<vmem>>, vector<16x256xbf16>,
    %c0_56 = arith.constant 0 : index
    %c0_57 = arith.constant 0 : index
    %186 = vector.load %arg7[%c0_56, %c0_57] : memref<144x48xbf16, #tpu.memory_space<vmem>>, vector<144x48xbf16>
    %c0_58 = arith.constant 0 : index
    %c0_59 = arith.constant 0 : index
    %187 = vector.load %arg10[%c0_58, %c0_59] : memref<64x256xbf16, #tpu.memory_space<vmem>>, vector<48x256xbf16>
    %cst_60 = arith.constant dense<0.000000e+00> : vector<144x256xf32>
    %188 = tpu.matmul %186, %187, %cst_60 {dimension_numbers = #tpu.dot_dimension_numbers<[1], [0], [0], [1], [0, 0, 1, 1], [], []>} : vector<144x48xbf16>, vector<48x256xbf16>, vector<144x256xf32> -> vector<144x256xf32>
    %c144_i32 = arith.constant 144 : i32
    %189 = vector.broadcast %c144_i32 : i32 to vector<1x256xi32>
    %190 = arith.cmpi sge, %8, %189 : vector<1x256xi32>
    %c112_i32 = arith.constant 112 : i32
    %191 = vector.broadcast %c112_i32 : i32 to vector<1x256xi32>
    %192 = arith.cmpi slt, %8, %191 : vector<1x256xi32>
    %c9_i32 = arith.constant 9 : i32
    %193 = vector.broadcast %c9_i32 : i32 to vector<1x256xi32>
    %194 = arith.cmpi sge, %9, %193 : vector<1x256xi32>
    %c7_i32 = arith.constant 7 : i32
    %195 = vector.broadcast %c7_i32 : i32 to vector<1x256xi32>
    %196 = arith.cmpi slt, %9, %195 : vector<1x256xi32>
    %cst_61 = arith.constant 0.000000e+00 : f32
    %197 = vector.broadcast %cst_61 : f32 to vector<16x256xf32>
    %198 = vector.extract_strided_slice %188 {offsets = [0, 0], sizes = [16, 256], strides = [1, 1]} : vector<144x256xf32> to vector<16x256xf32>
    %c153_i32 = arith.constant 153 : i32
    %199 = tpu.dynamic_rotate %198 by %c153_i32 dim 1 : vector<16x256xf32>, i32 -> vector<16x256xf32>
    %200 = arith.andi %190, %194 : vector<1x256xi1>
    %cst_62 = arith.constant 0.000000e+00 : f32
    %201 = vector.shape_cast %200 : vector<1x256xi1> to vector<1x256xi1>
    %202 = vector.broadcast %201 : vector<1x256xi1> to vector<16x256xi1>
    %203 = vector.broadcast %cst_62 : f32 to vector<16x256xf32>
    %204 = arith.select %202, %199, %203 : vector<16x256xi1>, vector<16x256xf32>
    %205 = arith.addf %197, %204 : vector<16x256xf32>
    %206 = vector.extract_strided_slice %188 {offsets = [16, 0], sizes = [16, 256], strides = [1, 1]} : vector<144x256xf32> to vector<16x256xf32>
    %c144_i32_63 = arith.constant 144 : i32
    %207 = tpu.dynamic_rotate %206 by %c144_i32_63 dim 1 : vector<16x256xf32>, i32 -> vector<16x256xf32>
    %cst_64 = arith.constant 0.000000e+00 : f32
    %208 = vector.shape_cast %190 : vector<1x256xi1> to vector<1x256xi1>
    %209 = vector.broadcast %208 : vector<1x256xi1> to vector<16x256xi1>
    %210 = vector.broadcast %cst_64 : f32 to vector<16x256xf32>
    %211 = arith.select %209, %207, %210 : vector<16x256xi1>, vector<16x256xf32>
    %212 = arith.addf %205, %211 : vector<16x256xf32>
    %213 = vector.extract_strided_slice %188 {offsets = [32, 0], sizes = [16, 256], strides = [1, 1]} : vector<144x256xf32> to vector<16x256xf32>
    %c135_i32 = arith.constant 135 : i32
    %214 = tpu.dynamic_rotate %213 by %c135_i32 dim 1 : vector<16x256xf32>, i32 -> vector<16x256xf32>
    %215 = arith.andi %190, %196 : vector<1x256xi1>
    %cst_65 = arith.constant 0.000000e+00 : f32
    %216 = vector.shape_cast %215 : vector<1x256xi1> to vector<1x256xi1>
    %217 = vector.broadcast %216 : vector<1x256xi1> to vector<16x256xi1>
    %218 = vector.broadcast %cst_65 : f32 to vector<16x256xf32>
    %219 = arith.select %217, %214, %218 : vector<16x256xi1>, vector<16x256xf32>
    %220 = arith.addf %212, %219 : vector<16x256xf32>
    %221 = vector.extract_strided_slice %188 {offsets = [48, 0], sizes = [16, 256], strides = [1, 1]} : vector<144x256xf32> to vector<16x256xf32>
    %c9_i32_66 = arith.constant 9 : i32
    %222 = tpu.dynamic_rotate %221 by %c9_i32_66 dim 1 : vector<16x256xf32>, i32 -> vector<16x256xf32>
    %cst_67 = arith.constant 0.000000e+00 : f32
    %223 = vector.shape_cast %194 : vector<1x256xi1> to vector<1x256xi1>
    %224 = vector.broadcast %223 : vector<1x256xi1> to vector<16x256xi1>
    %225 = vector.broadcast %cst_67 : f32 to vector<16x256xf32>
    %226 = arith.select %224, %222, %225 : vector<16x256xi1>, vector<16x256xf32>
    %227 = arith.addf %220, %226 : vector<16x256xf32>
    %228 = vector.extract_strided_slice %188 {offsets = [64, 0], sizes = [16, 256], strides = [1, 1]} : vector<144x256xf32> to vector<16x256xf32>
    %229 = arith.addf %227, %228 : vector<16x256xf32>
    %230 = vector.extract_strided_slice %188 {offsets = [80, 0], sizes = [16, 256], strides = [1, 1]} : vector<144x256xf32> to vector<16x256xf32>
    %c247_i32 = arith.constant 247 : i32
    %231 = tpu.dynamic_rotate %230 by %c247_i32 dim 1 : vector<16x256xf32>, i32 -> vector<16x256xf32>
    %cst_68 = arith.constant 0.000000e+00 : f32
    %232 = vector.shape_cast %196 : vector<1x256xi1> to vector<1x256xi1>
    %233 = vector.broadcast %232 : vector<1x256xi1> to vector<16x256xi1>
    %234 = vector.broadcast %cst_68 : f32 to vector<16x256xf32>
    %235 = arith.select %233, %231, %234 : vector<16x256xi1>, vector<16x256xf32>
    %236 = arith.addf %229, %235 : vector<16x256xf32>
    %237 = vector.extract_strided_slice %188 {offsets = [96, 0], sizes = [16, 256], strides = [1, 1]} : vector<144x256xf32> to vector<16x256xf32>
    %c121_i32 = arith.constant 121 : i32
    %238 = tpu.dynamic_rotate %237 by %c121_i32 dim 1 : vector<16x256xf32>, i32 -> vector<16x256xf32>
    %239 = arith.andi %192, %194 : vector<1x256xi1>
    %cst_69 = arith.constant 0.000000e+00 : f32
    %240 = vector.shape_cast %239 : vector<1x256xi1> to vector<1x256xi1>
    %241 = vector.broadcast %240 : vector<1x256xi1> to vector<16x256xi1>
    %242 = vector.broadcast %cst_69 : f32 to vector<16x256xf32>
    %243 = arith.select %241, %238, %242 : vector<16x256xi1>, vector<16x256xf32>
    %244 = arith.addf %236, %243 : vector<16x256xf32>
    %245 = vector.extract_strided_slice %188 {offsets = [112, 0], sizes = [16, 256], strides = [1, 1]} : vector<144x256xf32> to vector<16x256xf32>
    %c112_i32_70 = arith.constant 112 : i32
    %246 = tpu.dynamic_rotate %245 by %c112_i32_70 dim 1 : vector<16x256xf32>, i32 -> vector<16x256xf32>
    %cst_71 = arith.constant 0.000000e+00 : f32
    %247 = vector.shape_cast %192 : vector<1x256xi1> to vector<1x256xi1>
    %248 = vector.broadcast %247 : vector<1x256xi1> to vector<16x256xi1>
    %249 = vector.broadcast %cst_71 : f32 to vector<16x256xf32>
    %250 = arith.select %248, %246, %249 : vector<16x256xi1>, vector<16x256xf32>
    %251 = arith.addf %244, %250 : vector<16x256xf32>
    %252 = vector.extract_strided_slice %188 {offsets = [128, 0], sizes = [16, 256], strides = [1, 1]} : vector<144x256xf32> to vector<16x256xf32>
    %c103_i32 = arith.constant 103 : i32
    %253 = tpu.dynamic_rotate %252 by %c103_i32 dim 1 : vector<16x256xf32>, i32 -> vector<16x256xf32>
    %254 = arith.andi %192, %196 : vector<1x256xi1>
    %cst_72 = arith.constant 0.000000e+00 : f32
    %255 = vector.shape_cast %254 : vector<1x256xi1> to vector<1x256xi1>
    %256 = vector.broadcast %255 : vector<1x256xi1> to vector<16x256xi1>
    %257 = vector.broadcast %cst_72 : f32 to vector<16x256xf32>
    %258 = arith.select %256, %253, %257 : vector<16x256xi1>, vector<16x256xf32>
    %259 = arith.addf %251, %258 : vector<16x256xf32>
    %c0_73 = arith.constant 0 : index
    %c0_74 = arith.constant 0 : index
    %260 = vector.load %arg8[%c0_73, %c0_74] : memref<16x1xf32, #tpu.memory_space<vmem>>, vector<16x1xf32>
    %261 = vector.broadcast %260 : vector<16x1xf32> to vector<16x256xf32>
    %262 = arith.addf %259, %261 : vector<16x256xf32>
    %cst_75 = arith.constant 0.000000e+00 : f32
    %263 = vector.broadcast %cst_75 : f32 to vector<16x256xf32>
    %264 = arith.cmpf oge, %262, %263 : vector<16x256xf32>
    %cst_76 = arith.constant 0.00999999977 : f32
    %265 = vector.broadcast %cst_76 : f32 to vector<16x256xf32>
    %266 = arith.mulf %265, %262 : vector<16x256xf32>
    %267 = arith.select %264, %262, %266 : vector<16x256xi1>, vector<16x256xf32>
    %268 = vector.extract_strided_slice %267 {offsets = [0, 0], sizes = [3, 256], strides = [1, 1]} : vector<16x256xf32> to vector<3x256xf32>
    %c0_77 = arith.constant 0 : index
    %c10 = arith.constant 10 : index
    %c0_78 = arith.constant 0 : index
    %269 = vector.load %arg9[%c0_77, %c10, %c0_78] : memref<1x13x256xf32, #tpu.memory_space<vmem>>, vector<1x3x256xf32>
    %270 = vector.shape_cast %269 : vector<1x3x256xf32> to vector<3x256xf32>
    %271 = vector.shape_cast %268 : vector<3x256xf32> to vector<1x3x256xf32>
    tpu.vector_store %arg9[%c0_77, %c10, %c0_78], %271 {strides = array<i32>} : memref<1x13x256xf32, #tpu.memory_space<vmem>>, vector<1x3x256xf32>,
    %272 = arith.truncf %267 : vector<16x256xf32> to vector<16x256xbf16>
    %c48 = arith.constant 48 : index
    %c0_79 = arith.constant 0 : index
    %273 = vector.load %arg10[%c48, %c0_79] : memref<64x256xbf16, #tpu.memory_space<vmem>>, vector<16x256xbf16>
    tpu.vector_store %arg10[%c48, %c0_79], %272 {strides = array<i32>} : memref<64x256xbf16, #tpu.memory_space<vmem>>, vector<16x256xbf16>,
    return
  }
  func.func @transform_0(%arg0: i32) -> (i32, i32) {
    %c0_i32 = arith.constant 0 : i32
    %c0_i32_0 = arith.constant 0 : i32
    %c0_i32_1 = arith.constant 0 : i32
    return %c0_i32, %c0_i32_0 : i32, i32
  }
  func.func @transform_1(%arg0: i32) -> (i32, i32, i32) {
    %c0_i32 = arith.constant 0 : i32
    %c0_i32_0 = arith.constant 0 : i32
    %c0_i32_1 = arith.constant 0 : i32
    return %arg0, %c0_i32, %c0_i32_0 : i32, i32, i32
  }
  func.func @transform_2(%arg0: i32) -> (i32, i32) {
    %c0_i32 = arith.constant 0 : i32
    %c0_i32_0 = arith.constant 0 : i32
    %c0_i32_1 = arith.constant 0 : i32
    return %c0_i32, %c0_i32_0 : i32, i32
  }
  func.func @transform_3(%arg0: i32) -> (i32, i32) {
    %c0_i32 = arith.constant 0 : i32
    %c0_i32_0 = arith.constant 0 : i32
    %c0_i32_1 = arith.constant 0 : i32
    return %c0_i32, %c0_i32_0 : i32, i32
  }
  func.func @transform_4(%arg0: i32) -> (i32, i32) {
    %c0_i32 = arith.constant 0 : i32
    %c0_i32_0 = arith.constant 0 : i32
    %c0_i32_1 = arith.constant 0 : i32
    return %c0_i32, %c0_i32_0 : i32, i32
  }
  func.func @transform_5(%arg0: i32) -> (i32, i32) {
    %c0_i32 = arith.constant 0 : i32
    %c0_i32_0 = arith.constant 0 : i32
    %c0_i32_1 = arith.constant 0 : i32
    return %c0_i32, %c0_i32_0 : i32, i32
  }
  func.func @transform_6(%arg0: i32) -> (i32, i32) {
    %c0_i32 = arith.constant 0 : i32
    %c0_i32_0 = arith.constant 0 : i32
    %c0_i32_1 = arith.constant 0 : i32
    return %c0_i32, %c0_i32_0 : i32, i32
  }
  func.func @transform_7(%arg0: i32) -> (i32, i32) {
    %c0_i32 = arith.constant 0 : i32
    %c0_i32_0 = arith.constant 0 : i32
    %c0_i32_1 = arith.constant 0 : i32
    return %c0_i32, %c0_i32_0 : i32, i32
  }
  func.func @transform_8(%arg0: i32) -> (i32, i32, i32) {
    %c0_i32 = arith.constant 0 : i32
    %c0_i32_0 = arith.constant 0 : i32
    %c0_i32_1 = arith.constant 0 : i32
    return %arg0, %c0_i32, %c0_i32_0 : i32, i32, i32
  }
}

</mosaic_0001>

<bundles_post_ra>
// kernel: tpu_custom_call.1
= control target key start
LH: loop header
LB: loop body
LE: loop exit
PB: predicated region body
PF: predicated region fallthrough
CT: control target
= control target key end

     0   :  { %s2165_s27 = smov 0   ;;  %s3081_s0 = inlined_call_operand.vmem [shape: s32[1,256], index: 0, kind: input, shape index: {}]   ;;  %s3082_s1 = inlined_call_operand.vmem [shape: f32[2,16,256], index: 1, kind: input, shape index: {}]   ;;  %s3083_s2 = inlined_call_operand.vmem [shape: bf16[144,16], index: 2, kind: input, shape index: {}]   ;;  %s3084_s3 = inlined_call_operand.vmem [shape: f32[16,1], index: 3, kind: input, shape index: {}]   ;;  %s3085_s4 = inlined_call_operand.vmem [shape: bf16[144,32], index: 4, kind: input, shape index: {}]   ;;  %s3086_s5 = inlined_call_operand.vmem [shape: f32[16,1], index: 5, kind: input, shape index: {}]   ;;  %s3087_s6 = inlined_call_operand.vmem [shape: bf16[144,48], index: 6, kind: input, shape index: {}]   ;;  %s3088_s7 = inlined_call_operand.vmem [shape: f32[16,1], index: 7, kind: input, shape index: {}]   ;;  %s3089_s8 = inlined_call_operand.vmem [shape: f32[2,13,256], index: 8, kind: output, shape index: {}]  }
   0x1 LB: > { %s1955_s28 = sadd.s32 4294967295, %s2093_s27   ;;  %p1959_p0 = scmp.ge.s32.totalorder %s2093_s27, 1  ;;  %s2093_s27 = sphi %s2165_s27, %s18_s27  }
   0x2   : > { %p262_p1 = scmp.lt.s32.totalorder %s2093_s27, 3 }
   0x4   : > { %p263_p2 = pnand %p1959_p0, %p262_p1 }
   0x5   : > { %p296_p3 = scmp.lt.s32.totalorder (!%p263_p2), %s1955_s28, 1  ;;  %v2095_v0 = vmov (!%p263_p2), 0   ;;  %v2059_v7 = vld [vmem:[%s3083_s2] sm:$0xff] (!%p263_p2)   ;;  %v2060_v8 = vld [vmem:[%s3083_s2 + $0x28] sm:$0xff] (!%p263_p2)   ;;  %vm386_vm0 = vcmask (!%p263_p2), 130048   ;;  %v2062_v12 = vld [vmem:[%s3083_s2 + $0x30] sm:$0xff] (!%p263_p2)   ;;  %v317_v62 = vlaneseq (!%p263_p2) }
   0x6   : > { %266 = sbr.rel (%p263_p2) target bundleno = 1242 (0x4da), region = 52  ;;  %446 = vmatprep.mubr.bf16.mxu0 (!%p263_p2), %v2095_v0  ;;  %496 = vmatprep.mubr.bf16.mxu1 (!%p263_p2), %v2095_v0  ;;  %v805_v9 = vld [vmem:[%s3084_s3] sm:$0xff] (!%p263_p2)  ;;  %v806_v10 = vld [vmem:[%s3084_s3 + $0x8] sm:$0xff] (!%p263_p2)  ;;  %v2063_v13 = vld [vmem:[%s3083_s2 + $0x10] sm:$0xff] (!%p263_p2)   ;;  %s2096_s16 = smov (!%p263_p2), 51  }
   0x7   : > { %2057 = vset.pattern.permute.xlu0 (!%p263_p2), %v2095_v0  ;;  %2058 = vset.pattern.permute.xlu1 (!%p263_p2), %v2095_v0  ;;  %v2061_v11 = vld [vmem:[%s3083_s2 + $0x8] sm:$0xff] (!%p263_p2)   ;;  %v2064_v14 = vld [vmem:[%s3083_s2 + $0x38] sm:$0xff] (!%p263_p2)   ;;  %v2066_v16 = vld [vmem:[%s3083_s2 + $0x40] sm:$0xff] (!%p263_p2)   ;;  %s2097_s17 = smov (!%p263_p2), 125   ;;  %s2098_s18 = smov (!%p263_p2), 48  }
   0x8   : > { %809 = vperm.xlu0 (!%p263_p2), %2057, %v805_v9   ;;  %814 = vperm.xlu1 (!%p263_p2), %2058, %v806_v10   ;;  %v2065_v15 = vld [vmem:[%s3083_s2 + $0x18] sm:$0xff] (!%p263_p2)   ;;  %v2067_v17 = vld [vmem:[%s3083_s2 + $0x20] sm:$0xff] (!%p263_p2)   ;;  %s2099_s19 = smov (!%p263_p2), 83   ;;  %s2100_s20 = smov (!%p263_p2), 45   ;;  %v1332_v54 = vld [vmem:[%s3086_s5 + $0x8] sm:$0xff] (!%p263_p2) }
   0x9   : > { %s2101_s21 = smov (!%p263_p2), 80   ;;  %s2102_s22 = smov (!%p263_p2), 3   ;;  %v1331_v55 = vld [vmem:[%s3086_s5] sm:$0xff] (!%p263_p2) }
   0xa   : > { %s2103_s23 = smov (!%p263_p2), 77   ;;  %s2105_s30 = smov (!%p263_p2), 96  }
   0xb   : > { %s2106_s9 = smov (!%p263_p2), 90   ;;  %s2108_s11 = smov (!%p263_p2), 122  }
   0xc   : > { %s2109_s12 = smov (!%p263_p2), 38   ;;  %s2110_s14 = smov (!%p263_p2), 32  }
   0xd   : > { %s3127_s28 = smov (!%p296_p3, %s1955_s28), 1  ;;  %s2111_s15 = smov 26  }
   0xe   : > { %s2020_s29 = sshll.u32 %s3127_s28, 5 }
   0xf   : > { %s300_s10 = scalar_lea.vmem %s3082_s1, %s2020_s29  ;;  %s2183_s13 = scalar_lea.vmem %s3089_s8, %s2020_s29 }
  0x10   : > { %v308_v1 = vld [vmem:[%s300_s10 + $0x8] sm:$0xff]  ;;  %v310_v2 = vld [vmem:[%s300_s10 + $0x18] sm:$0xff]  ;;  %v307_v3 = vld [vmem:[%s300_s10] sm:$0xff]  ;;  %s2104_s29 = smov 102  }
  0x11   : > { %312 = vst [vmem:[%s2183_s13 + $0x8] sm:$0xf] %v308_v1  ;;  %v314_v4 = vpack.c.bf16 %v310_v2, %v308_v1  ;;  %v309_v5 = vld [vmem:[%s300_s10 + $0x10] sm:$0xff]  ;;  %311 = vst [vmem:[%s2183_s13] sm:$0xf] %v307_v3  ;;  %v2271_v2 = vld [vmem:[%s3081_s0] sm:$0x3] }
  0x12   : > { %v313_v6 = vpack.c.bf16 %v309_v5, %v307_v3  ;;  %v558_v3 = vshrl.u32 %v317_v62, 7  ;;  %vm541_vm1 = vcmp.ge.s32.totalorder %v2271_v2, 3  ;;  %vm542_vm2 = vcmp.lt.s32.totalorder %v2271_v2, 13  ;;  %s2107_s10 = smov 6  }
  0x13   : > { %414 = vmatprep.subr.bf16.mxu0 %v314_v4  ;;  %2022 = vmatprep.subr.bf16.mxu1 %v314_v4 }
  0x14   : > { %415 = vmatpush1.bf16.msra.mxu0 %v313_v6  ;;  %2023 = vmatpush1.bf16.msra.mxu1 %v313_v6  ;;  %v2285_v10 = vsub.s32 1, %v558_v3 }
  0x15   : > { %940 = vmatprep.subr.bf16.mxu1 %v314_v4  ;;  %1470 = vmatprep.subr.bf16.mxu0 %v314_v4 }
  0x17   : > { %1973 = vmatmul.mubr.msk.bf16.vlgmr.msra.gmra.mrb[0].mxu0 %vm386_vm0, %v2059_v7  ;;  %1978 = vmatmul.mubr.msk.bf16.vlgmr.msra.gmra.mrb[0].mxu1 %vm386_vm0, %v2060_v8  ;;  %v556_v7 = vsel %vm541_vm1, 1, %v2095_v0 }
  0x18   : > { %456 = vmatprep.mubr.bf16.mxu0 %v2095_v0  ;;  %506 = vmatprep.mubr.bf16.mxu1 %v2095_v0 }
  0x19   : > { %941 = vmatpush1.bf16.msra.mxu1 %v313_v6  ;;  %1471 = vmatpush1.bf16.msra.mxu0 %v313_v6  ;;  %v2278_v6 = vsub.s32 0, %v558_v3 }
  0x1f   : > { %1974 = vmatmul.mubr.msk.bf16.gmra.mrb[4].mxu0 %vm386_vm0, %v2061_v11  ;;  %1979 = vmatmul.mubr.msk.bf16.gmra.mrb[4].mxu1 %vm386_vm0, %v2062_v12  ;;  %v2288_v11 = vand.u32 127, %v317_v62  ;;  %v2291_v12 = vrot.slane %v556_v7, %v2278_v6 }
  0x20   : > { %466 = vmatprep.mubr.bf16.mxu0 %v2095_v0  ;;  %516 = vmatprep.mubr.bf16.mxu1 %v2095_v0 }
  0x21   : > { %vm537_vm3 = vcmp.ge.s32.totalorder %v2288_v11, 48  ;;  %vm565_vm4 = vcmp.ne.s32.totalorder %v2291_v12, 0  ;;  %vm551_vm12 = vcmp.lt.s32.totalorder %v2288_v11, 51 }
  0x22   : > { %vm567_vm6 = vmand %vm537_vm3, %vm565_vm4 }
  0x27   : > { %1975 = vmatmul.mubr.msk.bf16.gmra.mrb[8].mxu0 %vm386_vm0, %v2063_v13  ;;  %1980 = vmatmul.mubr.msk.bf16.gmra.mrb[8].mxu1 %vm386_vm0, %v2064_v14  ;;  %v627_v14 = vsel %vm542_vm2, 1, %v2095_v0 }
  0x28   : > { %476 = vmatprep.mubr.bf16.mxu0 %v2095_v0  ;;  %526 = vmatprep.mubr.bf16.mxu1 %v2095_v0 }
  0x2f   : > { %1976 = vmatmul.mubr.msk.bf16.gmra.mrb[12].mxu0 %vm386_vm0, %v2065_v15  ;;  %1981 = vmatmul.mubr.msk.bf16.gmra.mrb[12].mxu1 %vm386_vm0, %v2066_v16  ;;  %v2299_v16 = vrot.slane %v556_v7, %v2285_v10 }
  0x30   : > { %486 = vmatprep.mubr.bf16.mxu0 %v2095_v0  ;;  %972 = vmatprep.mubr.bf16.mxu1 %v2095_v0 }
  0x31   : > { %vm566_vm5 = vcmp.ne.s32.totalorder %v2299_v16, 0 }
  0x37   : > { %1977 = vmatmul.mubr.msk.bf16.gmra.mrb[16].mxu0 %vm386_vm0, %v2067_v17  ;;  %v2304_v17 = vrot.slane %v627_v14, %v2278_v6  ;;  %vm695_vm0 = vcmp.lt.s32.totalorder %v2288_v11, 125 }
  0x38   : > { %1502 = vmatprep.mubr.bf16.mxu0 %v2095_v0 }
  0x39   : > { %vm636_vm7 = vcmp.ne.s32.totalorder %v2304_v17, 0  ;;  %vm700_vm1 = vcmp.eq.s32.totalorder %v2304_v17, 1 }
  0x3a   : > { %vm638_vm10 = vmand %vm537_vm3, %vm636_vm7 }
  0x87   : > { %v2252_v56 = vpop.permute.xlu0 %809  ;;  %v2254_v57 = vpop.permute.xlu1 %814 }
  0xea   : > { %v448_v18 = vpop.f32.mrb[0].mxu0  ;;  %v498_v19 = vpop.f32.mrb[0].mxu1 }
  0xeb   : > { %v500_v20 = vpop.f32.mrb[1].mxu1  ;;  %543 = vrot.lane.b32.xlu0 %v448_v18, %s2096_s16  ;;  %v450_v21 = vpop.f32.mrb[1].mxu0 }
  0xec   : > { %v502_v22 = vpop.f32.mrb[2].mxu1  ;;  %547 = vrot.lane.b32.xlu1 %v450_v21, %s2096_s16  ;;  %v452_v23 = vpop.f32.mrb[2].mxu0  ;;  %v2318_v21 = vrot.slane %v627_v14, %v2285_v10 }
  0xed   : > { %v454_v24 = vpop.f32.mrb[3].mxu0  ;;  %v504_v25 = vpop.f32.mrb[3].mxu1 }
  0xee   : > { %vm637_vm9 = vcmp.ne.s32.totalorder %v2318_v21, 0  ;;  %vm701_vm2 = vcmp.eq.s32.totalorder %v2318_v21, 1 }
  0xef   : > { %687 = vrot.lane.b32.xlu0 %v498_v19, %s2097_s17 }
  0xf0   : > { %689 = vrot.lane.b32.xlu1 %v502_v22, %s2097_s17 }
  0xf2   : > { %v458_v26 = vpop.f32.mrb[4].mxu0  ;;  %v508_v27 = vpop.f32.mrb[4].mxu1 }
  0xf3   : > { %691 = vrot.lane.b32.xlu0 %v500_v20, %s2097_s17  ;;  %v460_v28 = vpop.f32.mrb[5].mxu0  ;;  %v510_v29 = vpop.f32.mrb[5].mxu1  ;;  %v2309_v20 = vadd.s32 128, %v2288_v11 }
  0xf4   : > { %549 = vrot.lane.b32.xlu1 %v454_v24, %s2096_s16  ;;  %v462_v30 = vpop.f32.mrb[6].mxu0  ;;  %v512_v31 = vpop.f32.mrb[6].mxu1  ;;  %v570_v24 = vsel %vm566_vm5, 1, %v2095_v0 }
  0xf5   : > { %v464_v32 = vpop.f32.mrb[7].mxu0  ;;  %v514_v33 = vpop.f32.mrb[7].mxu1  ;;  %vm540_vm8 = vcmp.lt.s32.totalorder %v2309_v20, 208 }
  0xf6   : > { %vm724_vm11 = vmand %vm540_vm8, %vm566_vm5  ;;  %vm622_vm5 = vcmp.lt.s32.totalorder %v2288_v11, 45 }
  0xf7   : > { %545 = vrot.lane.b32.xlu0 %v452_v23, %s2096_s16  ;;  %v569_v23 = vsel %vm567_vm6, 1, %v2095_v0  ;;  %vm784_vm13 = vmand %vm540_vm8, %vm637_vm9  ;;  %s2112_s16 = smov 25  }
  0xf8   : > { %693 = vrot.lane.b32.xlu1 %v504_v25, %s2097_s17  ;;  %s2113_s17 = smov 16  }
  0xfa   : > { %v518_v34 = vpop.f32.mrb[8].mxu1  ;;  %v468_v35 = vpop.f32.mrb[8].mxu0 }
  0xfb   : > { %589 = vrot.lane.b32.xlu0 %v458_v26, %s2098_s18  ;;  %v470_v36 = vpop.f32.mrb[9].mxu0  ;;  %v520_v37 = vpop.f32.mrb[9].mxu1  ;;  %v574_v26 = vrot.slane %v569_v23, %v2278_v6 }
  0xfc   : > { %591 = vrot.lane.b32.xlu1 %v462_v30, %s2098_s18  ;;  %v472_v38 = vpop.f32.mrb[10].mxu0  ;;  %v522_v39 = vpop.f32.mrb[10].mxu1  ;;  %v641_v30 = vsel %vm637_vm9, 1, %v2095_v0  ;;  %vm668_vm9 = vcmp.lt.s32.totalorder %v2288_v11, 3 }
  0xfd   : > { %v524_v40 = vpop.f32.mrb[11].mxu1  ;;  %v474_v41 = vpop.f32.mrb[11].mxu0  ;;  %vm2349_vm14 = vcmp.eq.s32.totalorder %v574_v26, 1 }
  0xff   : > { %710 = vrot.lane.b32.xlu0 %v508_v27, %s2099_s19  ;;  %v578_v27 = vrot.slane %v570_v24, %v2278_v6 }
 0x100   : > { %712 = vrot.lane.b32.xlu1 %v512_v31, %s2099_s19 }
 0x101   : > { %vm2353_vm15 = vcmp.eq.s32.totalorder %v578_v27, 1 }
 0x102   : > { %v478_v42 = vpop.f32.mrb[12].mxu0  ;;  %v528_v43 = vpop.f32.mrb[12].mxu1 }
 0x103   : > { %593 = vrot.lane.b32.xlu0 %v460_v28, %s2098_s18  ;;  %v480_v44 = vpop.f32.mrb[13].mxu0  ;;  %v530_v45 = vpop.f32.mrb[13].mxu1 }
 0x104   : > { %595 = vrot.lane.b32.xlu1 %v464_v32, %s2098_s18  ;;  %v482_v46 = vpop.f32.mrb[14].mxu0  ;;  %v532_v47 = vpop.f32.mrb[14].mxu1  ;;  %v725_v32 = vsel %vm565_vm4, 1, %v2095_v0  ;;  %vm597_vm4 = vcmp.lt.s32.totalorder %v2288_v11, 48  ;;  %s2114_s18 = smov 7  }
 0x105   : > { %v484_v48 = vpop.f32.mrb[15].mxu0  ;;  %v534_v49 = vpop.f32.mrb[15].mxu1 }
 0x107   : > { %714 = vrot.lane.b32.xlu0 %v510_v29, %s2099_s19  ;;  %v640_v29 = vsel %vm638_vm10, 1, %v2095_v0  ;;  %vm673_vm10 = vcmp.eq.s32.totalorder %v2291_v12, 1 }
 0x108   : > { %716 = vrot.lane.b32.xlu1 %v514_v33, %s2099_s19  ;;  %v726_v33 = vsel %vm724_vm11, 1, %v2095_v0  ;;  %vm674_vm11 = vcmp.eq.s32.totalorder %v2299_v16, 1  ;;  %s2115_s19 = smov 9  }
 0x10a   : > { %v2238_v50 = vpop.f32.mrb[16].mxu0 }
 0x10b   : > { %614 = vrot.lane.b32.xlu0 %v468_v35, %s2100_s20  ;;  %v2240_v51 = vpop.f32.mrb[17].mxu0  ;;  %v649_v35 = vrot.slane %v641_v30, %v2278_v6 }
 0x10c   : > { %745 = vrot.lane.b32.xlu1 %v518_v34, %s2101_s21  ;;  %v2242_v52 = vpop.f32.mrb[18].mxu0  ;;  %v645_v34 = vrot.slane %v640_v29, %v2278_v6 }
 0x10d   : > { %v2244_v53 = vpop.f32.mrb[19].mxu0 }
 0x10e   : > { %vm2380_vm6 = vcmp.eq.s32.totalorder %v645_v34, 1 }
 0x10f   : > { %618 = vrot.lane.b32.xlu0 %v470_v36, %s2100_s20 }
 0x110   : > { %616 = vrot.lane.b32.xlu1 %v472_v38, %s2100_s20 }
 0x113   : > { %747 = vrot.lane.b32.xlu0 %v522_v39, %s2101_s21  ;;  %v730_v39 = vrot.slane %v725_v32, %v2278_v6 }
 0x114   : > { %620 = vrot.lane.b32.xlu1 %v474_v41, %s2100_s20  ;;  %v2365_v41 = vsel %vm636_vm7, 1, %v2095_v0  ;;  %vm2384_vm7 = vcmp.eq.s32.totalorder %v649_v35, 1  ;;  %s2116_s20 = smov 119  }
 0x117   : > { %660 = vrot.lane.b32.xlu0 %v478_v42, %s2102_s22 }
 0x118   : > { %662 = vrot.lane.b32.xlu1 %v482_v46, %s2102_s22 }
 0x11b   : > { %664 = vrot.lane.b32.xlu0 %v480_v44, %s2102_s22  ;;  %v734_v44 = vrot.slane %v726_v33, %v2278_v6 }
 0x11c   : > { %666 = vrot.lane.b32.xlu1 %v484_v48, %s2102_s22  ;;  %s2118_s22 = smov 112  }
 0x11f   : > { %751 = vrot.lane.b32.xlu0 %v524_v40, %s2101_s21 }
 0x120   : > { %749 = vrot.lane.b32.xlu1 %v520_v37, %s2101_s21  ;;  %s2117_s21 = smov 121  }
 0x123   : > { %772 = vrot.lane.b32.xlu0 %v532_v47, %s2103_s23 }
 0x124   : > { %770 = vrot.lane.b32.xlu1 %v528_v43, %s2103_s23 }
 0x127   : > { %776 = vrot.lane.b32.xlu0 %v534_v49, %s2103_s23 }
 0x128   : > { %774 = vrot.lane.b32.xlu1 %v530_v45, %s2103_s23  ;;  %v2377_v45 = vsel %vm784_vm13, 1, %v2095_v0  ;;  %vm718_vm13 = vcmp.lt.s32.totalorder %v2288_v11, 83  ;;  %s2119_s23 = smov 103  }
 0x129   : > { %v794_v3 = vrot.slane %v2377_v45, %v2278_v6 }
 0x12b   : > { %1340 = vperm.xlu0 %2057, %v1332_v54   ;;  %v790_v54 = vrot.slane %v2365_v41, %v2278_v6 }
 0x12c   : > { %1335 = vperm.xlu1 %2058, %v1331_v55  }
 0x15d   : > { %v2256_v58 = vpop.permute.xlu0 %543 }
 0x15e   : > { %v2258_v59 = vpop.permute.xlu1 %547 }
 0x15f   : > { %v552_v42 = vsel %vm551_vm12, %v2256_v58, %v2258_v59  ;;  %v554_v43 = vsel %vm551_vm12, %v2258_v59, %v2256_v58 }
 0x160   : > { %v581_v55 = vsel %vm2349_vm14, %v554_v43, 0.0  ;;  %v582_v58 = vsel %vm2353_vm15, %v552_v42, 0.0 }
 0x161   : > { %v2260_v60 = vpop.permute.xlu0 %687 }
 0x162   : > { %v2262_v61 = vpop.permute.xlu1 %689 }
 0x165   : > { %v2264_v63 = vpop.permute.xlu0 %691 }
 0x166   : > { %v2266_v1 = vpop.permute.xlu1 %549 }
 0x169   : > { %v2273_v4 = vpop.permute.xlu0 %545 }
 0x16a   : > { %v2276_v5 = vpop.permute.xlu1 %693  ;;  %v553_v7 = vsel %vm551_vm12, %v2273_v4, %v2266_v1  ;;  %v555_v14 = vsel %vm551_vm12, %v2266_v1, %v2273_v4  ;;  %v696_v1 = vsel %vm695_vm0, %v2260_v60, %v2264_v63  ;;  %v698_v4 = vsel %vm695_vm0, %v2264_v63, %v2260_v60 }
 0x16b   : > { %vm2444_vm12 = vcmp.eq.s32.totalorder %v730_v39, 1  ;;  %v583_v60 = vsel %vm2349_vm14, %v555_v14, 0.0  ;;  %v584_v63 = vsel %vm2353_vm15, %v553_v7, 0.0  ;;  %v702_v37 = vsel %vm700_vm1, %v696_v1, 0.0 }
 0x16c   : > { %v699_v46 = vsel %vm695_vm0, %v2276_v5, %v2262_v61  ;;  %vm778_vm14 = vcmp.lt.s32.totalorder %v2288_v11, 77  ;;  %vm2540_vm15 = vcmp.eq.s32.totalorder %v790_v54, 1 }
 0x16d   : > { %v2281_v8 = vpop.permute.xlu0 %589 }
 0x16e   : > { %v2283_v9 = vpop.permute.xlu1 %591 }
 0x171   : > { %v2293_v13 = vpop.permute.xlu0 %710 }
 0x172   : > { %v2296_v15 = vpop.permute.xlu1 %712 }
 0x175   : > { %v594_v18 = vpop.permute.xlu0 %593 }
 0x176   : > { %v2306_v19 = vpop.permute.xlu1 %595  ;;  %v600_v48 = vsel %vm597_vm4, %v594_v18, %v2281_v8  ;;  %v598_v26 = vsel %vm597_vm4, %v2281_v8, %v594_v18 }
 0x177   : > { %v601_v59 = vsel %vm597_vm4, %v2306_v19, %v2283_v9  ;;  %v606_v27 = vsel %vm537_vm3, %v600_v48, 0.0  ;;  %v599_v8 = vsel %vm597_vm4, %v2283_v9, %v2306_v19 }
 0x178   : > { %v608_v18 = vsel %vm537_vm3, %v601_v59, 0.0  ;;  %vm753_vm3 = vcmp.lt.s32.totalorder %v2288_v11, 80  ;;  %v610_v35 = vadd.f32 %v606_v27, %v581_v55  ;;  %v613_v43 = vadd.f32 %v599_v8, %v584_v63 }
 0x179   : > { %v2320_v22 = vpop.permute.xlu0 %714  ;;  %v612_v42 = vadd.f32 %v608_v18, %v583_v60 }
 0x17a   : > { %v2325_v25 = vpop.permute.xlu1 %716  ;;  %v719_v1 = vsel %vm718_vm13, %v2293_v13, %v2320_v22 }
 0x17b   : > { %v720_v16 = vsel %vm718_vm13, %v2296_v15, %v2325_v25 }
 0x17c   : > { %v739_v21 = vsel %vm2444_vm12, %v720_v16, 0.0 }
 0x17d   : > { %v615_v28 = vpop.permute.xlu0 %614 }
 0x17e   : > { %v2338_v31 = vpop.permute.xlu1 %745 }
 0x181   : > { %v619_v38 = vpop.permute.xlu0 %618 }
 0x182   : > { %v617_v40 = vpop.permute.xlu1 %616  ;;  %v623_v23 = vsel %vm622_vm5, %v615_v28, %v619_v38  ;;  %v625_v24 = vsel %vm622_vm5, %v619_v38, %v615_v28  ;;  %v611_v38 = vadd.f32 %v598_v26, %v582_v58 }
 0x183   : > { %v652_v9 = vsel %vm2380_vm6, %v625_v24, 0.0  ;;  %v653_v19 = vsel %vm2384_vm7, %v623_v23, 0.0 }
 0x184   : > { %v656_v47 = vadd.f32 %v652_v9, %v610_v35  ;;  %v657_v48 = vadd.f32 %v653_v19, %v611_v38  ;;  %v705_v19 = vsel %vm701_vm2, %v699_v46, 0.0 }
 0x185   : > { %v2392_v49 = vpop.permute.xlu0 %747 }
 0x186   : > { %v621_v62 = vpop.permute.xlu1 %620 }
 0x187   : > { %v624_v29 = vsel %vm622_vm5, %v617_v40, %v621_v62  ;;  %v626_v30 = vsel %vm622_vm5, %v621_v62, %v617_v40  ;;  %vm2448_vm5 = vcmp.eq.s32.totalorder %v734_v44, 1  ;;  %v703_v40 = vsel %vm701_vm2, %v698_v4, 0.0 }
 0x188   : > { %v654_v39 = vsel %vm2380_vm6, %v626_v30, 0.0  ;;  %v655_v36 = vsel %vm2384_vm7, %v624_v29, 0.0  ;;  %v697_v44 = vsel %vm695_vm0, %v2262_v61, %v2276_v5  ;;  %v721_v4 = vsel %vm718_vm13, %v2320_v22, %v2293_v13 }
 0x189   : > { %v661_v33 = vpop.permute.xlu0 %660  ;;  %v658_v58 = vadd.f32 %v654_v39, %v612_v42  ;;  %v659_v59 = vadd.f32 %v655_v36, %v613_v43  ;;  %v704_v12 = vsel %vm700_vm1, %v697_v44, 0.0  ;;  %v722_v13 = vsel %vm718_vm13, %v2325_v25, %v2296_v15 }
 0x18a   : > { %v663_v34 = vpop.permute.xlu1 %662  ;;  %vm2547_vm0 = vcmp.eq.s32.totalorder %v794_v3, 1  ;;  %vm912_vm6 = vcmask 261120   ;;  %vm1067_vm7 = vcmp.ge.s32.totalorder %v2271_v2, 6 }
 0x18d   : > { %v665_v55 = vpop.permute.xlu0 %664 }
 0x18e   : > { %v669_v62 = vsel %vm668_vm9, %v661_v33, %v665_v55  ;;  %v671_v7 = vsel %vm668_vm9, %v665_v55, %v661_v33  ;;  %v667_v14 = vpop.permute.xlu1 %666 }
 0x18f   : > { %v675_v23 = vsel %vm673_vm10, %v671_v7, 0.0  ;;  %v676_v24 = vsel %vm674_vm11, %v669_v62, 0.0  ;;  %v670_v61 = vsel %vm668_vm9, %v663_v34, %v667_v14  ;;  %v672_v5 = vsel %vm668_vm9, %v667_v14, %v663_v34 }
 0x190   : > { %v677_v26 = vsel %vm673_vm10, %v672_v5, 0.0  ;;  %v678_v27 = vsel %vm674_vm11, %v670_v61, 0.0  ;;  %v679_v29 = vadd.f32 %v675_v23, %v656_v47  ;;  %v680_v30 = vadd.f32 %v676_v24, %v657_v48 }
 0x191   : > { %v681_v8 = vadd.f32 %v677_v26, %v658_v58  ;;  %v752_v18 = vpop.permute.xlu0 %751  ;;  %v682_v33 = vadd.f32 %v678_v27, %v659_v59  ;;  %v737_v34 = vsel %vm2444_vm12, %v719_v1, 0.0  ;;  %vm1068_vm9 = vcmp.lt.s32.totalorder %v2271_v2, 10 }
 0x192   : > { %v683_v60 = vadd.f32 %v679_v29, %v2238_v50  ;;  %v684_v63 = vadd.f32 %v680_v30, %v2240_v51  ;;  %v750_v9 = vpop.permute.xlu1 %749  ;;  %v738_v50 = vsel %vm2448_vm5, %v721_v4, 0.0  ;;  %v757_v15 = vsel %vm753_vm3, %v752_v18, %v2392_v49 }
 0x193   : > { %v685_v17 = vadd.f32 %v681_v8, %v2242_v52  ;;  %v686_v22 = vadd.f32 %v682_v33, %v2244_v53  ;;  %v740_v53 = vsel %vm2448_vm5, %v722_v13, 0.0  ;;  %v755_v43 = vsel %vm753_vm3, %v2392_v49, %v752_v18 }
 0x194   : > { %v706_v51 = vadd.f32 %v702_v37, %v683_v60  ;;  %v707_v35 = vadd.f32 %v703_v40, %v684_v63  ;;  %v756_v37 = vsel %vm753_vm3, %v750_v9, %v2338_v31  ;;  %v765_v44 = vsel %vm540_vm8, %v757_v15, 0.0  ;;  %v2076_v15 = vld [vmem:[%s3085_s4 + $0x40] sm:$0xff]  }
 0x195   : > { %v708_v38 = vadd.f32 %v704_v12, %v685_v17  ;;  %v709_v25 = vadd.f32 %v705_v19, %v686_v22  ;;  %v773_v52 = vpop.permute.xlu0 %772  ;;  %v754_v49 = vsel %vm753_vm3, %v2338_v31, %v750_v9  ;;  %v763_v48 = vsel %vm540_vm8, %v756_v37, 0.0  ;;  %v2069_v22 = vld [vmem:[%s3085_s4 + $0x8] sm:$0xff]  }
 0x196   : > { %v741_v39 = vadd.f32 %v737_v34, %v706_v51  ;;  %v742_v36 = vadd.f32 %v738_v50, %v707_v35  ;;  %v771_v40 = vpop.permute.xlu1 %770  ;;  %v2070_v34 = vld [vmem:[%s3085_s4 + $0x10] sm:$0xff]   ;;  %v2071_v50 = vld [vmem:[%s3085_s4 + $0x18] sm:$0xff]   ;;  %v2072_v51 = vld [vmem:[%s3085_s4 + $0x20] sm:$0xff]   ;;  %vm1063_vm10 = vcmp.ge.s32.totalorder %v2288_v11, 96 }
 0x197   : > { %v743_v42 = vadd.f32 %v739_v21, %v708_v38  ;;  %v744_v28 = vadd.f32 %v740_v53, %v709_v25  ;;  %v2073_v35 = vld [vmem:[%s3085_s4 + $0x28] sm:$0xff]   ;;  %v2074_v21 = vld [vmem:[%s3085_s4 + $0x30] sm:$0xff]   ;;  %v2075_v38 = vld [vmem:[%s3085_s4 + $0x38] sm:$0xff]  }
 0x198   : > { %v766_v55 = vadd.f32 %v754_v49, %v741_v39  ;;  %v767_v58 = vadd.f32 %v763_v48, %v742_v36 }
 0x199   : > { %v768_v47 = vadd.f32 %v755_v43, %v743_v42  ;;  %v777_v41 = vpop.permute.xlu0 %776  ;;  %v769_v54 = vadd.f32 %v765_v44, %v744_v28 }
 0x19a   : > { %v780_v59 = vsel %vm778_vm14, %v773_v52, %v777_v41  ;;  %v782_v45 = vsel %vm778_vm14, %v777_v41, %v773_v52  ;;  %v775_v3 = vpop.permute.xlu1 %774 }
 0x19b   : > { %v799_v62 = vsel %vm2540_vm15, %v780_v59, 0.0  ;;  %v800_v31 = vsel %vm2547_vm0, %v782_v45, 0.0  ;;  %v779_v7 = vsel %vm778_vm14, %v771_v40, %v775_v3  ;;  %v781_v14 = vsel %vm778_vm14, %v775_v3, %v771_v40 }
 0x19c   : > { %v803_v23 = vadd.f32 %v799_v62, %v768_v47  ;;  %v804_v24 = vadd.f32 %v800_v31, %v769_v54  ;;  %v797_v61 = vsel %vm2540_vm15, %v779_v7, 0.0  ;;  %v798_v5 = vsel %vm2547_vm0, %v781_v14, 0.0 }
 0x19d   : > { %v801_v26 = vadd.f32 %v797_v61, %v766_v55  ;;  %v802_v27 = vadd.f32 %v798_v5, %v767_v58  ;;  %vm1066_vm15 = vcmp.lt.s32.totalorder %v2309_v20, 160 }
 0x19e   : > { %v819_v29 = vadd.f32 %v2254_v57, %v803_v23  ;;  %v820_v30 = vadd.f32 %v2254_v57, %v804_v24 }
 0x19f   : > { %v817_v1 = vadd.f32 %v2252_v56, %v801_v26  ;;  %v818_v4 = vadd.f32 %v2252_v56, %v802_v27  ;;  %v2068_v56 = vld [vmem:[%s3085_s4] sm:$0xff]  }
 0x1a0   : > { %vm823_vm8 = vcmp.ge.f32.partialorder %v819_v29, 0.0  ;;  %v827_v8 = vmul.f32 0.01, %v819_v29  ;;  %vm824_vm1 = vcmp.ge.f32.partialorder %v820_v30, 0.0  ;;  %v828_v18 = vmul.f32 0.01, %v820_v30 }
 0x1a1   : > { %vm821_vm2 = vcmp.ge.f32.partialorder %v817_v1, 0.0  ;;  %v825_v33 = vmul.f32 0.01, %v817_v1  ;;  %vm822_vm4 = vcmp.ge.f32.partialorder %v818_v4, 0.0  ;;  %v826_v12 = vmul.f32 0.01, %v818_v4 }
 0x1a2   : > { %v832_v16 = vsel %vm824_vm1, %v820_v30, %v828_v18  ;;  %v831_v60 = vsel %vm823_vm8, %v819_v29, %v827_v8  ;;  %vm1077_vm8 = vcmp.lt.s32.totalorder %v2288_v11, 102 }
 0x1a3   : > { %v830_v63 = vsel %vm822_vm4, %v818_v4, %v826_v12  ;;  %v829_v9 = vsel %vm821_vm2, %v817_v1, %v825_v33  ;;  %v1860_v4 = vld [vmem:[%s3088_s7] sm:$0xff]  ;;  %vm1123_vm4 = vcmp.lt.s32.totalorder %v2288_v11, 96 }
 0x1a4   : > { %v836_v19 = vrot.slane %v830_v63, 4  ;;  %v842_v57 = vpack.c.bf16 %v832_v16, %v830_v63  ;;  %v835_v13 = vrot.slane %v829_v9, 4  ;;  %v841_v17 = vpack.c.bf16 %v831_v60, %v829_v9 }
 0x1a6   : > { %840 = vst [vmem:[%s2183_s13 + $0x8] sm:$0x70] %v836_v19  ;;  %942 = vmatprep.subr.bf16.mxu1 %v842_v57  ;;  %1472 = vmatprep.subr.bf16.mxu0 %v842_v57  ;;  %839 = vst [vmem:[%s2183_s13] sm:$0x70] %v835_v13 }
 0x1a7   : > { %943 = vmatpush1.bf16.msra.mxu1 %v841_v17  ;;  %1473 = vmatpush1.bf16.msra.mxu0 %v841_v17 }
 0x1aa   : > { %1991 = vmatmul.mubr.msk.bf16.vlgmr.msra.gmra.mrb[16].mxu1 %vm912_vm6, %v2068_v56  ;;  %v2635_v18 = vpop.permute.xlu0 %1340  ;;  %v1082_v56 = vsel %vm1067_vm7, 1, %v2095_v0 }
 0x1ab   : > { %982 = vmatprep.mubr.bf16.mxu1 %v2095_v0  ;;  %v2633_v8 = vpop.permute.xlu1 %1335 }
 0x1b2   : > { %1992 = vmatmul.mubr.msk.bf16.gmra.mrb[20].mxu1 %vm912_vm6, %v2069_v22 }
 0x1b3   : > { %992 = vmatprep.mubr.bf16.mxu1 %v2095_v0 }
 0x1ba   : > { %1993 = vmatmul.mubr.msk.bf16.gmra.mrb[24].mxu1 %vm912_vm6, %v2070_v34  ;;  %v1153_v34 = vsel %vm1068_vm9, 1, %v2095_v0 }
 0x1bb   : > { %1002 = vmatprep.mubr.bf16.mxu1 %v2095_v0 }
 0x1c2   : > { %1994 = vmatmul.mubr.msk.bf16.gmra.mrb[28].mxu1 %vm912_vm6, %v2071_v50  ;;  %v2656_v50 = vrot.slane %v1082_v56, %v2278_v6 }
 0x1c3   : > { %1012 = vmatprep.mubr.bf16.mxu1 %v2095_v0 }
 0x1c4   : > { %vm1091_vm11 = vcmp.ne.s32.totalorder %v2656_v50, 0 }
 0x1c5   : > { %vm1093_vm12 = vmand %vm1063_vm10, %vm1091_vm11 }
 0x1ca   : > { %1995 = vmatmul.mubr.msk.bf16.gmra.mrb[32].mxu1 %vm912_vm6, %v2072_v51 }
 0x1cb   : > { %1022 = vmatprep.mubr.bf16.mxu1 %v2095_v0 }
 0x1d2   : > { %1996 = vmatmul.mubr.msk.bf16.gmra.mrb[36].mxu1 %vm912_vm6, %v2073_v35  ;;  %v2661_v35 = vrot.slane %v1153_v34, %v2278_v6 }
 0x1d3   : > { %1032 = vmatprep.mubr.bf16.mxu1 %v2095_v0 }
 0x1d4   : > { %vm1162_vm13 = vcmp.ne.s32.totalorder %v2661_v35, 0 }
 0x1d5   : > { %vm1164_vm14 = vmand %vm1063_vm10, %vm1162_vm13 }
 0x1da   : > { %1997 = vmatmul.mubr.msk.bf16.gmra.mrb[40].mxu1 %vm912_vm6, %v2074_v21  ;;  %v2665_v21 = vrot.slane %v1082_v56, %v2285_v10 }
 0x1db   : > { %1042 = vmatprep.mubr.bf16.mxu1 %v2095_v0 }
 0x1dc   : > { %vm1092_vm5 = vcmp.ne.s32.totalorder %v2665_v21, 0 }
 0x1dd   : > { %vm1250_vm0 = vmand %vm1066_vm15, %vm1092_vm5 }
 0x1e2   : > { %1998 = vmatmul.mubr.msk.bf16.gmra.mrb[44].mxu1 %vm912_vm6, %v2075_v38  ;;  %v2671_v38 = vrot.slane %v1153_v34, %v2285_v10 }
 0x1e3   : > { %1052 = vmatprep.mubr.bf16.mxu1 %v2095_v0 }
 0x1e4   : > { %vm1163_vm3 = vcmp.ne.s32.totalorder %v2671_v38, 0 }
 0x1ea   : > { %1999 = vmatmul.mubr.msk.bf16.gmra.mrb[48].mxu1 %vm912_vm6, %v2076_v15  ;;  %vm1148_vm6 = vcmp.lt.s32.totalorder %v2288_v11, 90 }
 0x27d   : > { %v974_v25 = vpop.f32.mrb[16].mxu1 }
 0x27e   : > { %1069 = vrot.lane.b32.xlu1 %v974_v25, %s2104_s29  ;;  %v976_v52 = vpop.f32.mrb[17].mxu1  ;;  %v1095_v25 = vsel %vm1093_vm12, 1, %v2095_v0  ;;  %vm1310_vm12 = vmand %vm1066_vm15, %vm1163_vm3 }
 0x27f   : > { %v978_v53 = vpop.f32.mrb[18].mxu1 }
 0x280   : > { %1071 = vrot.lane.b32.xlu0 %v978_v53, %s2104_s29  ;;  %v980_v39 = vpop.f32.mrb[19].mxu1  ;;  %v1096_v53 = vsel %vm1092_vm5, 1, %v2095_v0  ;;  %vm1199_vm5 = vcmp.eq.s32.totalorder %v2656_v50, 1 }
 0x282   : > { %1073 = vrot.lane.b32.xlu1 %v976_v52, %s2104_s29 }
 0x284   : > { %1075 = vrot.lane.b32.xlu0 %v980_v39, %s2104_s29  ;;  %v1166_v39 = vsel %vm1164_vm14, 1, %v2095_v0  ;;  %vm1200_vm14 = vcmp.eq.s32.totalorder %v2665_v21, 1 }
 0x285   : > { %v984_v36 = vpop.f32.mrb[20].mxu1 }
 0x286   : > { %1115 = vrot.lane.b32.xlu1 %v984_v36, %s2105_s30  ;;  %v986_v37 = vpop.f32.mrb[21].mxu1  ;;  %v1167_v36 = vsel %vm1163_vm3, 1, %v2095_v0  ;;  %vm1244_vm3 = vcmp.lt.s32.totalorder %v2288_v11, 38 }
 0x287   : > { %v988_v40 = vpop.f32.mrb[22].mxu1 }
 0x288   : > { %1117 = vrot.lane.b32.xlu0 %v988_v40, %s2105_s30  ;;  %v990_v42 = vpop.f32.mrb[23].mxu1  ;;  %v1100_v40 = vrot.slane %v1095_v25, %v2278_v6 }
 0x28a   : > { %1119 = vrot.lane.b32.xlu1 %v986_v37, %s2105_s30  ;;  %vm2710_vm1 = vcmp.eq.s32.totalorder %v1100_v40, 1 }
 0x28c   : > { %1121 = vrot.lane.b32.xlu0 %v990_v42, %s2105_s30  ;;  %v1104_v42 = vrot.slane %v1096_v53, %v2278_v6 }
 0x28d   : > { %v994_v28 = vpop.f32.mrb[24].mxu1 }
 0x28e   : > { %1140 = vrot.lane.b32.xlu1 %v994_v28, %s2106_s9  ;;  %v996_v43 = vpop.f32.mrb[25].mxu1  ;;  %vm2714_vm2 = vcmp.eq.s32.totalorder %v1104_v42, 1 }
 0x28f   : > { %v998_v44 = vpop.f32.mrb[26].mxu1 }
 0x290   : > { %1142 = vrot.lane.b32.xlu0 %v998_v44, %s2106_s9  ;;  %v1000_v32 = vpop.f32.mrb[27].mxu1  ;;  %v1175_v44 = vrot.slane %v1167_v36, %v2278_v6 }
 0x292   : > { %1144 = vrot.lane.b32.xlu1 %v996_v43, %s2106_s9  ;;  %v1171_v43 = vrot.slane %v1166_v39, %v2278_v6  ;;  %vm2729_vm9 = vcmp.eq.s32.totalorder %v1175_v44, 1 }
 0x294   : > { %1146 = vrot.lane.b32.xlu0 %v1000_v32, %s2106_s9  ;;  %vm2725_vm7 = vcmp.eq.s32.totalorder %v1171_v43, 1 }
 0x295   : > { %v1004_v46 = vpop.f32.mrb[28].mxu1 }
 0x296   : > { %1186 = vrot.lane.b32.xlu1 %v1004_v46, %s2107_s10  ;;  %v1006_v47 = vpop.f32.mrb[29].mxu1 }
 0x297   : > { %v1008_v49 = vpop.f32.mrb[30].mxu1 }
 0x298   : > { %1188 = vrot.lane.b32.xlu0 %v1008_v49, %s2107_s10  ;;  %v1010_v48 = vpop.f32.mrb[31].mxu1 }
 0x29a   : > { %1190 = vrot.lane.b32.xlu1 %v1006_v47, %s2107_s10 }
 0x29c   : > { %1192 = vrot.lane.b32.xlu0 %v1010_v48, %s2107_s10  ;;  %v1251_v48 = vsel %vm1091_vm11, 1, %v2095_v0  ;;  %vm1194_vm11 = vcmp.lt.s32.totalorder %v2288_v11, 6 }
 0x29d   : > { %v2622_v41 = vpop.f32.mrb[32].mxu1 }
 0x29e   : > { %v2624_v54 = vpop.f32.mrb[33].mxu1 }
 0x29f   : > { %v2626_v55 = vpop.f32.mrb[34].mxu1 }
 0x2a0   : > { %v2628_v58 = vpop.f32.mrb[35].mxu1 }
 0x2a5   : > { %v1024_v59 = vpop.f32.mrb[36].mxu1 }
 0x2a6   : > { %1213 = vrot.lane.b32.xlu1 %v1024_v59, %s2108_s11  ;;  %v1026_v45 = vpop.f32.mrb[37].mxu1 }
 0x2a7   : > { %v1028_v3 = vpop.f32.mrb[38].mxu1 }
 0x2a8   : > { %1215 = vrot.lane.b32.xlu0 %v1028_v3, %s2108_s11  ;;  %v1030_v62 = vpop.f32.mrb[39].mxu1  ;;  %v1252_v3 = vsel %vm1250_vm0, 1, %v2095_v0  ;;  %vm1226_vm0 = vcmp.eq.s32.totalorder %v2661_v35, 1 }
 0x2aa   : > { %1217 = vrot.lane.b32.xlu1 %v1026_v45, %s2108_s11 }
 0x2ac   : > { %1219 = vrot.lane.b32.xlu0 %v1030_v62, %s2108_s11  ;;  %v2741_v62 = vsel %vm1162_vm13, 1, %v2095_v0  ;;  %vm1221_vm13 = vcmp.lt.s32.totalorder %v2288_v11, 122 }
 0x2ad   : > { %v1034_v31 = vpop.f32.mrb[40].mxu1 }
 0x2ae   : > { %1236 = vrot.lane.b32.xlu1 %v1034_v31, %s2109_s12  ;;  %v1036_v7 = vpop.f32.mrb[41].mxu1 }
 0x2af   : > { %v1038_v14 = vpop.f32.mrb[42].mxu1 }
 0x2b0   : > { %1238 = vrot.lane.b32.xlu0 %v1038_v14, %s2109_s12  ;;  %v1040_v23 = vpop.f32.mrb[43].mxu1 }
 0x2b2   : > { %1240 = vrot.lane.b32.xlu1 %v1036_v7, %s2109_s12 }
 0x2b4   : > { %1242 = vrot.lane.b32.xlu0 %v1040_v23, %s2109_s12 }
 0x2b5   : > { %v1044_v24 = vpop.f32.mrb[44].mxu1 }
 0x2b6   : > { %1271 = vrot.lane.b32.xlu1 %v1044_v24, %s2110_s14  ;;  %v1046_v61 = vpop.f32.mrb[45].mxu1 }
 0x2b7   : > { %v1048_v5 = vpop.f32.mrb[46].mxu1 }
 0x2b8   : > { %1273 = vrot.lane.b32.xlu0 %v1048_v5, %s2110_s14  ;;  %v1050_v26 = vpop.f32.mrb[47].mxu1 }
 0x2ba   : > { %1275 = vrot.lane.b32.xlu1 %v1046_v61, %s2110_s14  ;;  %v1256_v61 = vrot.slane %v1251_v48, %v2278_v6 }
 0x2bc   : > { %1277 = vrot.lane.b32.xlu0 %v1050_v26, %s2110_s14 }
 0x2bd   : > { %v1054_v27 = vpop.f32.mrb[48].mxu1 }
 0x2be   : > { %1296 = vrot.lane.b32.xlu1 %v1054_v27, %s2111_s15  ;;  %v1056_v29 = vpop.f32.mrb[49].mxu1  ;;  %v1260_v27 = vrot.slane %v1252_v3, %v2278_v6 }
 0x2bf   : > { %v1058_v30 = vpop.f32.mrb[50].mxu1 }
 0x2c0   : > { %1298 = vrot.lane.b32.xlu0 %v1058_v30, %s2111_s15  ;;  %v1060_v1 = vpop.f32.mrb[51].mxu1  ;;  %v1316_v30 = vrot.slane %v2741_v62, %v2278_v6 }
 0x2c2   : > { %1300 = vrot.lane.b32.xlu1 %v1056_v29, %s2111_s15  ;;  %v1312_v29 = vsel %vm1310_vm12, 1, %v2095_v0 }
 0x2c4   : > { %1302 = vrot.lane.b32.xlu0 %v1060_v1, %s2111_s15 }
 0x2c6   : > { %1864 = vperm.xlu1 %2058, %v1860_v4  }
 0x2f0   : > { %v1070_v33 = vpop.permute.xlu1 %1069 }
 0x2f2   : > { %v2637_v12 = vpop.permute.xlu0 %1071 }
 0x2f4   : > { %v1074_v16 = vpop.permute.xlu1 %1073 }
 0x2f5   : > { %v1080_v31 = vsel %vm1077_vm8, %v1074_v16, %v1070_v33  ;;  %v1078_v14 = vsel %vm1077_vm8, %v1070_v33, %v1074_v16 }
 0x2f6   : > { %v1076_v60 = vpop.permute.xlu0 %1075  ;;  %v1107_v1 = vsel %vm2710_vm1, %v1080_v31, 0.0  ;;  %v1108_v16 = vsel %vm2714_vm2, %v1078_v14, 0.0 }
 0x2f7   : > { %v1081_v23 = vsel %vm1077_vm8, %v1076_v60, %v2637_v12  ;;  %v1079_v5 = vsel %vm1077_vm8, %v2637_v12, %v1076_v60  ;;  %vm1227_vm8 = vcmp.eq.s32.totalorder %v2671_v38, 1 }
 0x2f8   : > { %v2639_v63 = vpop.permute.xlu1 %1115  ;;  %v1109_v60 = vsel %vm2710_vm1, %v1081_v23, 0.0  ;;  %vm2846_vm1 = vcmp.eq.s32.totalorder %v1260_v27, 1 }
 0x2fa   : > { %v2641_v9 = vpop.permute.xlu0 %1117 }
 0x2fc   : > { %v2643_v19 = vpop.permute.xlu1 %1119 }
 0x2fd   : > { %v1126_v24 = vsel %vm1123_vm4, %v2643_v19, %v2639_v63  ;;  %v1124_v56 = vsel %vm1123_vm4, %v2639_v63, %v2643_v19 }
 0x2fe   : > { %v2645_v57 = vpop.permute.xlu0 %1121  ;;  %v1132_v34 = vsel %vm1063_vm10, %v1126_v24, 0.0  ;;  %v1320_v24 = vrot.slane %v1312_v29, %v2278_v6 }
 0x2ff   : > { %v1127_v4 = vsel %vm1123_vm4, %v2645_v57, %v2641_v9  ;;  %v1125_v43 = vsel %vm1123_vm4, %v2641_v9, %v2645_v57  ;;  %vm1304_vm4 = vcmp.lt.s32.totalorder %v2288_v11, 26 }
 0x300   : > { %v2647_v13 = vpop.permute.xlu1 %1140  ;;  %v1134_v19 = vsel %vm1063_vm10, %v1127_v4, 0.0  ;;  %vm2839_vm10 = vcmp.eq.s32.totalorder %v1256_v61, 1 }
 0x301   : > { %v1138_v57 = vadd.f32 %v1134_v19, %v1109_v60 }
 0x302   : > { %v2650_v17 = vpop.permute.xlu0 %1142 }
 0x304   : > { %v1145_v22 = vpop.permute.xlu1 %1144 }
 0x305   : > { %v1149_v33 = vsel %vm1148_vm6, %v2647_v13, %v1145_v22  ;;  %v1151_v12 = vsel %vm1148_vm6, %v1145_v22, %v2647_v13  ;;  %v1110_v13 = vsel %vm2714_vm2, %v1079_v5, 0.0  ;;  %vm1279_vm2 = vcmp.lt.s32.totalorder %v2288_v11, 32 }
 0x306   : > { %v2658_v51 = vpop.permute.xlu0 %1146  ;;  %v1178_v39 = vsel %vm2725_vm7, %v1151_v12, 0.0  ;;  %v1179_v36 = vsel %vm2729_vm9, %v1149_v33, 0.0  ;;  %v1139_v59 = vadd.f32 %v1125_v43, %v1110_v13 }
 0x307   : > { %v1152_v22 = vsel %vm1148_vm6, %v2658_v51, %v2650_v17  ;;  %v1150_v40 = vsel %vm1148_vm6, %v2650_v17, %v2658_v51  ;;  %vm2860_vm6 = vcmp.eq.s32.totalorder %v1316_v30, 1 }
 0x308   : > { %v2668_v2 = vpop.permute.xlu1 %1186  ;;  %v1180_v46 = vsel %vm2725_vm7, %v1152_v22, 0.0  ;;  %v1181_v62 = vsel %vm2729_vm9, %v1150_v40, 0.0  ;;  %vm2872_vm7 = vcmp.eq.s32.totalorder %v1320_v24, 1 }
 0x309   : > { %v1184_v5 = vadd.f32 %v1180_v46, %v1138_v57  ;;  %v1185_v4 = vadd.f32 %v1181_v62, %v1139_v59 }
 0x30a   : > { %v2674_v15 = vpop.permute.xlu0 %1188 }
 0x30c   : > { %v1191_v52 = vpop.permute.xlu1 %1190 }
 0x30d   : > { %v1195_v53 = vsel %vm1194_vm11, %v2668_v2, %v1191_v52  ;;  %v1197_v63 = vsel %vm1194_vm11, %v1191_v52, %v2668_v2  ;;  %v1136_v2 = vadd.f32 %v1132_v34, %v1107_v1  ;;  %v1137_v52 = vadd.f32 %v1124_v56, %v1108_v16 }
 0x30e   : > { %v2694_v37 = vpop.permute.xlu0 %1192  ;;  %v1201_v47 = vsel %vm1199_vm5, %v1197_v63, 0.0  ;;  %v1202_v17 = vsel %vm1200_vm14, %v1195_v53, 0.0 }
 0x30f   : > { %v1198_v44 = vsel %vm1194_vm11, %v2694_v37, %v2674_v15  ;;  %v1196_v51 = vsel %vm1194_vm11, %v2674_v15, %v2694_v37  ;;  %v1182_v48 = vadd.f32 %v1178_v39, %v1136_v2  ;;  %v1183_v3 = vadd.f32 %v1179_v36, %v1137_v52 }
 0x310   : > { %v1203_v31 = vsel %vm1199_vm5, %v1198_v44, 0.0  ;;  %v1204_v1 = vsel %vm1200_vm14, %v1196_v51, 0.0  ;;  %vm1442_vm5 = vcmask 392192  }
 0x311   : > { %v1205_v15 = vadd.f32 %v1201_v47, %v1182_v48  ;;  %v1206_v37 = vadd.f32 %v1202_v17, %v1183_v3  ;;  %v1207_v61 = vadd.f32 %v1203_v31, %v1184_v5  ;;  %v1208_v33 = vadd.f32 %v1204_v1, %v1185_v4 }
 0x313   : > { %v1211_v22 = vadd.f32 %v1207_v61, %v2626_v55  ;;  %v1212_v19 = vadd.f32 %v1208_v33, %v2628_v58 }
 0x318   : > { %v2699_v28 = vpop.permute.xlu1 %1213 }
 0x31a   : > { %v2703_v32 = vpop.permute.xlu0 %1215 }
 0x31c   : > { %v2720_v49 = vpop.permute.xlu1 %1217 }
 0x31d   : > { %v1222_v29 = vsel %vm1221_vm13, %v2699_v28, %v2720_v49  ;;  %v1224_v21 = vsel %vm1221_vm13, %v2720_v49, %v2699_v28  ;;  %v1209_v28 = vadd.f32 %v1205_v15, %v2622_v41  ;;  %v1210_v49 = vadd.f32 %v1206_v37, %v2624_v54 }
 0x31e   : > { %v2748_v7 = vpop.permute.xlu0 %1219 }
 0x31f   : > { %v1223_v12 = vsel %vm1221_vm13, %v2703_v32, %v2748_v7  ;;  %v1225_v16 = vsel %vm1221_vm13, %v2748_v7, %v2703_v32  ;;  %v1228_v32 = vsel %vm1226_vm0, %v1222_v29, 0.0  ;;  %v1229_v7 = vsel %vm1227_vm8, %v1224_v21, 0.0 }
 0x320   : > { %v2764_v26 = vpop.permute.xlu1 %1236  ;;  %v1230_v53 = vsel %vm1226_vm0, %v1223_v12, 0.0  ;;  %v1232_v35 = vadd.f32 %v1228_v32, %v1209_v28  ;;  %v1233_v40 = vadd.f32 %v1229_v7, %v1210_v49 }
 0x321   : > { %v1234_v2 = vadd.f32 %v1230_v53, %v1211_v22  ;;  %v2078_v22 = vld [vmem:[%s3087_s6 + $0x8] sm:$0xff]   ;;  %v2079_v53 = vld [vmem:[%s3087_s6 + $0x10] sm:$0xff]  }
 0x322   : > { %v1239_v25 = vpop.permute.xlu0 %1238 }
 0x324   : > { %v1241_v42 = vpop.permute.xlu1 %1240 }
 0x325   : > { %v1245_v30 = vsel %vm1244_vm3, %v2764_v26, %v1241_v42  ;;  %v1247_v34 = vsel %vm1244_vm3, %v1241_v42, %v2764_v26  ;;  %v1231_v26 = vsel %vm1227_vm8, %v1225_v16, 0.0 }
 0x326   : > { %v1243_v9 = vpop.permute.xlu0 %1242  ;;  %v1263_v39 = vsel %vm2839_vm10, %v1245_v30, 0.0  ;;  %v1235_v58 = vadd.f32 %v1231_v26, %v1212_v19  ;;  %v2080_v26 = vld [vmem:[%s3087_s6 + $0x18] sm:$0xff]   ;;  %v2082_v19 = vld [vmem:[%s3087_s6 + $0x28] sm:$0xff]  }
 0x327   : > { %v1246_v13 = vsel %vm1244_vm3, %v1239_v25, %v1243_v9  ;;  %v1248_v41 = vsel %vm1244_vm3, %v1243_v9, %v1239_v25  ;;  %v1264_v25 = vsel %vm2846_vm1, %v1247_v34, 0.0  ;;  %v1267_v46 = vadd.f32 %v1263_v39, %v1232_v35  ;;  %v2083_v39 = vld [vmem:[%s3087_s6 + $0x30] sm:$0xff]  }
 0x328   : > { %v1272_v23 = vpop.permute.xlu1 %1271  ;;  %v1265_v38 = vsel %vm2839_vm10, %v1246_v13, 0.0  ;;  %v1266_v42 = vsel %vm2846_vm1, %v1248_v41, 0.0  ;;  %v1268_v47 = vadd.f32 %v1264_v25, %v1233_v40  ;;  %v2084_v25 = vld [vmem:[%s3087_s6 + $0x38] sm:$0xff]   ;;  %vm1594_vm3 = vcmp.ge.s32.totalorder %v2309_v20, 144 }
 0x329   : > { %v1269_v9 = vadd.f32 %v1265_v38, %v1234_v2  ;;  %v1270_v57 = vadd.f32 %v1266_v42, %v1235_v58 }
 0x32a   : > { %v1274_v50 = vpop.permute.xlu0 %1273 }
 0x32c   : > { %v1276_v60 = vpop.permute.xlu1 %1275 }
 0x32d   : > { %v1282_v63 = vsel %vm1279_vm2, %v1276_v60, %v1272_v23  ;;  %v1280_v52 = vsel %vm1279_vm2, %v1272_v23, %v1276_v60 }
 0x32e   : > { %v1278_v54 = vpop.permute.xlu0 %1277  ;;  %v1289_v43 = vsel %vm1066_vm15, %v1282_v63, 0.0  ;;  %v1292_v3 = vadd.f32 %v1280_v52, %v1267_v46  ;;  %v2081_v63 = vld [vmem:[%s3087_s6 + $0x20] sm:$0xff]  }
 0x32f   : > { %v1283_v55 = vsel %vm1279_vm2, %v1278_v54, %v1274_v50  ;;  %v1281_v17 = vsel %vm1279_vm2, %v1274_v50, %v1278_v54  ;;  %v1293_v62 = vadd.f32 %v1289_v43, %v1268_v47  ;;  %vm1653_vm2 = vcmp.lt.s32.totalorder %v2288_v11, 16 }
 0x330   : > { %v1297_v36 = vpop.permute.xlu1 %1296  ;;  %v1291_v51 = vsel %vm1066_vm15, %v1283_v55, 0.0  ;;  %v1294_v14 = vadd.f32 %v1281_v17, %v1269_v9  ;;  %v2085_v55 = vld [vmem:[%s3087_s6 + $0x40] sm:$0xff]  }
 0x331   : > { %v1295_v23 = vadd.f32 %v1291_v51, %v1270_v57 }
 0x332   : > { %v1299_v44 = vpop.permute.xlu0 %1298 }
 0x334   : > { %v1301_v48 = vpop.permute.xlu1 %1300 }
 0x335   : > { %v1305_v59 = vsel %vm1304_vm4, %v1297_v36, %v1301_v48  ;;  %v1307_v31 = vsel %vm1304_vm4, %v1301_v48, %v1297_v36 }
 0x336   : > { %v1323_v24 = vsel %vm2860_vm6, %v1305_v59, 0.0  ;;  %v1324_v5 = vsel %vm2872_vm7, %v1307_v31, 0.0  ;;  %v1303_v15 = vpop.permute.xlu0 %1302 }
 0x337   : > { %v1327_v37 = vadd.f32 %v1323_v24, %v1292_v3  ;;  %v1328_v1 = vadd.f32 %v1324_v5, %v1293_v62  ;;  %v1306_v4 = vsel %vm1304_vm4, %v1299_v44, %v1303_v15  ;;  %v1308_v45 = vsel %vm1304_vm4, %v1303_v15, %v1299_v44 }
 0x338   : > { %v1325_v50 = vsel %vm2860_vm6, %v1306_v4, 0.0  ;;  %v1326_v61 = vsel %vm2872_vm7, %v1308_v45, 0.0  ;;  %vm1678_vm4 = vcmp.lt.s32.totalorder %v2288_v11, 7  ;;  %vm1595_vm6 = vcmp.lt.s32.totalorder %v2288_v11, 112 }
 0x339   : > { %v1343_v29 = vadd.f32 %v2633_v8, %v1327_v37  ;;  %v1344_v21 = vadd.f32 %v2633_v8, %v1328_v1  ;;  %v1329_v33 = vadd.f32 %v1325_v50, %v1294_v14  ;;  %v1330_v12 = vadd.f32 %v1326_v61, %v1295_v23 }
 0x33b   : > { %vm1347_vm15 = vcmp.ge.f32.partialorder %v1343_v29, 0.0  ;;  %v1351_v16 = vmul.f32 0.01, %v1343_v29  ;;  %v1345_v60 = vadd.f32 %v2635_v18, %v1329_v33  ;;  %v1346_v28 = vadd.f32 %v2635_v18, %v1330_v12  ;;  %v2077_v18 = vld [vmem:[%s3087_s6] sm:$0xff]  }
 0x33c   : > { %vm1348_vm9 = vcmp.ge.f32.partialorder %v1344_v21, 0.0  ;;  %v1352_v27 = vmul.f32 0.01, %v1344_v21 }
 0x33d   : > { %vm1349_vm12 = vcmp.ge.f32.partialorder %v1345_v60, 0.0  ;;  %v1353_v49 = vmul.f32 0.01, %v1345_v60  ;;  %vm1350_vm11 = vcmp.ge.f32.partialorder %v1346_v28, 0.0  ;;  %v1354_v56 = vmul.f32 0.01, %v1346_v28 }
 0x33e   : > { %v1356_v30 = vsel %vm1348_vm9, %v1344_v21, %v1352_v27  ;;  %v1355_v34 = vsel %vm1347_vm15, %v1343_v29, %v1351_v16  ;;  %v2086_v16 = vld [vmem:[%s3081_s0] sm:$0x3]  ;;  %vm1607_vm15 = vcmp.lt.s32.totalorder %v2288_v11, 25  ;;  %vm1724_vm9 = vcmp.lt.s32.totalorder %v2288_v11, 9 }
 0x33f   : > { %v1358_v32 = vsel %vm1350_vm11, %v1346_v28, %v1354_v56  ;;  %v1362_v8 = vrot.slane %v1356_v30, 1  ;;  %v1357_v7 = vsel %vm1349_vm12, %v1345_v60, %v1353_v49  ;;  %v1361_v13 = vrot.slane %v1355_v34, 1 }
 0x340   : > { %v1370_v41 = vpack.c.bf16 %v1358_v32, %v1356_v30  ;;  %v1369_v54 = vpack.c.bf16 %v1357_v7, %v1355_v34  ;;  %vm1597_vm14 = vcmp.ge.s32.totalorder %v2086_v16, 9  ;;  %vm1598_vm13 = vcmp.lt.s32.totalorder %v2086_v16, 7 }
 0x341   : > { %1366 = vst [vmem:[%s2183_s13 + $0x18] ss:$-12 sps:$4 sm:$0x83] %v1362_v8   ;;  %1365 = vst [vmem:[%s2183_s13 + $0x10] ss:$-12 sps:$4 sm:$0x83] %v1361_v13  }
 0x342   : > { %1474 = vmatprep.subr.bf16.mxu0 %v1370_v41  ;;  %v1612_v60 = vsel %vm1597_vm14, 1, %v2095_v0  ;;  %v1683_v27 = vsel %vm1598_vm13, 1, %v2095_v0 }
 0x343   : > { %1475 = vmatpush1.bf16.msra.mxu0 %v1369_v54  ;;  %v1620_v49 = vrot.slane %v1612_v60, %v2285_v10  ;;  %v2997_v56 = vrot.slane %v1683_v27, %v2285_v10  ;;  %v1616_v54 = vrot.slane %v1612_v60, %v2278_v6 }
 0x345   : > { %v2992_v28 = vpop.permute.xlu1 %1864  ;;  %vm1622_vm0 = vcmp.ne.s32.totalorder %v1620_v49, 0  ;;  %vm1693_vm8 = vcmp.ne.s32.totalorder %v2997_v56, 0  ;;  %vm1621_vm7 = vcmp.ne.s32.totalorder %v1616_v54, 0  ;;  %vm1729_vm13 = vcmp.eq.s32.totalorder %v1616_v54, 1 }
 0x346   : > { %2009 = vmatmul.mubr.msk.bf16.vlgmr.msra.gmra.mrb[20].mxu0 %vm1442_vm5, %v2077_v18  ;;  %vm1624_vm10 = vmand %vm1594_vm3, %vm1622_vm0  ;;  %v3010_v18 = vrot.slane %v2095_v0, %v2278_v6 }
 0x347   : > { %1512 = vmatprep.mubr.bf16.mxu0 %v2095_v0  ;;  %vm1695_vm1 = vmand %vm1594_vm3, %vm1693_vm8  ;;  %v1626_v7 = vsel %vm1624_vm10, 1, %v2095_v0  ;;  %vm1730_vm8 = vcmp.eq.s32.totalorder %v1620_v49, 1  ;;  %vm1751_vm10 = vcmp.lt.s32.totalorder %v2288_v11, 119 }
 0x348   : > { %v1697_v41 = vsel %vm1695_vm1, 1, %v2095_v0  ;;  %vm1635_vm12 = vcmp.eq.s32.totalorder %v3010_v18, 1  ;;  %vm1779_vm11 = vmand %vm1595_vm6, %vm1621_vm7  ;;  %vm1774_vm1 = vcmp.lt.s32.totalorder %v2288_v11, 121 }
 0x34e   : > { %2010 = vmatmul.mubr.msk.bf16.gmra.mrb[24].mxu0 %vm1442_vm5, %v2078_v22  ;;  %v1634_v22 = vrot.slane %v1626_v7, %v2278_v6 }
 0x34f   : > { %1522 = vmatprep.mubr.bf16.mxu0 %v2095_v0 }
 0x356   : > { %2011 = vmatmul.mubr.msk.bf16.gmra.mrb[28].mxu0 %vm1442_vm5, %v2079_v53  ;;  %v1705_v53 = vrot.slane %v1697_v41, %v2278_v6 }
 0x357   : > { %1532 = vmatprep.mubr.bf16.mxu0 %v2095_v0 }
 0x358   : > { %vm3028_vm14 = vcmp.eq.s32.totalorder %v1705_v53, 1 }
 0x35e   : > { %2012 = vmatmul.mubr.msk.bf16.gmra.mrb[32].mxu0 %vm1442_vm5, %v2080_v26 }
 0x35f   : > { %1542 = vmatprep.mubr.bf16.mxu0 %v2095_v0 }
 0x366   : > { %2013 = vmatmul.mubr.msk.bf16.gmra.mrb[36].mxu0 %vm1442_vm5, %v2081_v63 }
 0x367   : > { %1552 = vmatprep.mubr.bf16.mxu0 %v2095_v0 }
 0x36e   : > { %2014 = vmatmul.mubr.msk.bf16.gmra.mrb[40].mxu0 %vm1442_vm5, %v2082_v19 }
 0x36f   : > { %1562 = vmatprep.mubr.bf16.mxu0 %v2095_v0 }
 0x376   : > { %2015 = vmatmul.mubr.msk.bf16.gmra.mrb[44].mxu0 %vm1442_vm5, %v2083_v39 }
 0x377   : > { %1572 = vmatprep.mubr.bf16.mxu0 %v2095_v0 }
 0x37e   : > { %2016 = vmatmul.mubr.msk.bf16.gmra.mrb[48].mxu0 %vm1442_vm5, %v2084_v25 }
 0x37f   : > { %1582 = vmatprep.mubr.bf16.mxu0 %v2095_v0 }
 0x386   : > { %2017 = vmatmul.mubr.msk.bf16.gmra.mrb[52].mxu0 %vm1442_vm5, %v2085_v55  ;;  %vm3024_vm5 = vcmp.eq.s32.totalorder %v1634_v22, 1 }
 0x419   : > { %v1504_v36 = vpop.f32.mrb[20].mxu0 }
 0x41a   : > { %v1506_v35 = vpop.f32.mrb[21].mxu0  ;;  %1599 = vrot.lane.b32.xlu1 %v1504_v36, %s2112_s16 }
 0x41b   : > { %1603 = vrot.lane.b32.xlu0 %v1506_v35, %s2112_s16  ;;  %v1508_v40 = vpop.f32.mrb[22].mxu0  ;;  %v1687_v35 = vrot.slane %v1683_v27, %v2278_v6 }
 0x41c   : > { %v1510_v38 = vpop.f32.mrb[23].mxu0 }
 0x41d   : > { %vm1692_vm0 = vcmp.ne.s32.totalorder %v1687_v35, 0 }
 0x421   : > { %v1514_v42 = vpop.f32.mrb[24].mxu0 }
 0x422   : > { %v1516_v2 = vpop.f32.mrb[25].mxu0  ;;  %1645 = vrot.lane.b32.xlu1 %v1514_v42, %s2113_s17 }
 0x423   : > { %1649 = vrot.lane.b32.xlu0 %v1516_v2, %s2113_s17  ;;  %v1518_v58 = vpop.f32.mrb[26].mxu0 }
 0x424   : > { %v1520_v52 = vpop.f32.mrb[27].mxu0 }
 0x429   : > { %v1524_v43 = vpop.f32.mrb[28].mxu0 }
 0x42a   : > { %v1526_v44 = vpop.f32.mrb[29].mxu0  ;;  %1670 = vrot.lane.b32.xlu1 %v1524_v43, %s2114_s18 }
 0x42b   : > { %1674 = vrot.lane.b32.xlu0 %v1526_v44, %s2114_s18  ;;  %v1528_v46 = vpop.f32.mrb[30].mxu0  ;;  %v1781_v44 = vsel %vm1779_vm11, 1, %v2095_v0 }
 0x42c   : > { %v1530_v47 = vpop.f32.mrb[31].mxu0 }
 0x431   : > { %v1534_v17 = vpop.f32.mrb[32].mxu0 }
 0x432   : > { %v1536_v51 = vpop.f32.mrb[33].mxu0  ;;  %1716 = vrot.lane.b32.xlu1 %v1534_v17, %s2115_s19 }
 0x433   : > { %1720 = vrot.lane.b32.xlu0 %v1536_v51, %s2115_s19  ;;  %v1538_v9 = vpop.f32.mrb[34].mxu0 }
 0x434   : > { %v1540_v57 = vpop.f32.mrb[35].mxu0 }
 0x439   : > { %v2984_v48 = vpop.f32.mrb[36].mxu0 }
 0x43a   : > { %v2986_v3 = vpop.f32.mrb[37].mxu0 }
 0x43b   : > { %v1548_v62 = vpop.f32.mrb[38].mxu0 }
 0x43c   : > { %v1550_v59 = vpop.f32.mrb[39].mxu0 }
 0x441   : > { %v1554_v31 = vpop.f32.mrb[40].mxu0 }
 0x442   : > { %v1556_v14 = vpop.f32.mrb[41].mxu0  ;;  %1743 = vrot.lane.b32.xlu1 %v1554_v31, %s2116_s20  ;;  %v1786_v31 = vrot.slane %v1781_v44, %v2278_v6 }
 0x443   : > { %1747 = vrot.lane.b32.xlu0 %v1556_v14, %s2116_s20  ;;  %v1558_v23 = vpop.f32.mrb[42].mxu0 }
 0x444   : > { %v1560_v24 = vpop.f32.mrb[43].mxu0  ;;  %vm1791_vm7 = vcmp.eq.s32.totalorder %v1786_v31, 1 }
 0x449   : > { %v1564_v5 = vpop.f32.mrb[44].mxu0 }
 0x44a   : > { %v1566_v15 = vpop.f32.mrb[45].mxu0  ;;  %1766 = vrot.lane.b32.xlu1 %v1564_v5, %s2117_s21 }
 0x44b   : > { %1770 = vrot.lane.b32.xlu0 %v1566_v15, %s2117_s21  ;;  %v1568_v37 = vpop.f32.mrb[46].mxu0 }
 0x44c   : > { %v1570_v1 = vpop.f32.mrb[47].mxu0 }
 0x451   : > { %v1574_v4 = vpop.f32.mrb[48].mxu0 }
 0x452   : > { %v1576_v45 = vpop.f32.mrb[49].mxu0  ;;  %1801 = vrot.lane.b32.xlu0 %v1574_v4, %s2118_s22 }
 0x453   : > { %1805 = vrot.lane.b32.xlu1 %v1576_v45, %s2118_s22  ;;  %v1578_v50 = vpop.f32.mrb[50].mxu0 }
 0x454   : > { %v1580_v61 = vpop.f32.mrb[51].mxu0 }
 0x459   : > { %v1584_v29 = vpop.f32.mrb[52].mxu0 }
 0x45a   : > { %v1586_v21 = vpop.f32.mrb[53].mxu0  ;;  %1825 = vrot.lane.b32.xlu0 %v1584_v29, %s2119_s23 }
 0x45b   : > { %1829 = vrot.lane.b32.xlu1 %v1586_v21, %s2119_s23  ;;  %v1588_v33 = vpop.f32.mrb[54].mxu0 }
 0x45c   : > { %v1590_v12 = vpop.f32.mrb[55].mxu0 }
 0x48c   : > { %v1600_v30 = vpop.permute.xlu1 %1599 }
 0x48d   : > { %v1604_v34 = vpop.permute.xlu0 %1603 }
 0x48e   : > { %v1608_v38 = vsel %vm1607_vm15, %v1600_v30, %v1604_v34  ;;  %v1610_v42 = vsel %vm1607_vm15, %v1604_v34, %v1600_v30  ;;  %vm1833_vm15 = vcmp.lt.s32.totalorder %v2288_v11, 103 }
 0x48f   : > { %v1637_v47 = vsel %vm1635_vm12, %v1608_v38, 0.0  ;;  %v1638_v17 = vsel %vm3024_vm5, %v1610_v42, 0.0 }
 0x494   : > { %v1646_v32 = vpop.permute.xlu1 %1645 }
 0x495   : > { %v1650_v8 = vpop.permute.xlu0 %1649 }
 0x496   : > { %v1656_v19 = vsel %vm1653_vm2, %v1650_v8, %v1646_v32  ;;  %vm1756_vm2 = vcmp.eq.s32.totalorder %v1687_v35, 1 }
 0x497   : > { %v1663_v52 = vsel %vm1594_vm3, %v1656_v19, 0.0  ;;  %vm1838_vm3 = vmand %vm1595_vm6, %vm1692_vm0 }
 0x498   : > { %v1667_v62 = vadd.f32 %v1663_v52, %v1638_v17  ;;  %v1840_v1 = vsel %vm1838_vm3, 1, %v2095_v0 }
 0x499   : > { %v1845_v12 = vrot.slane %v1840_v1, %v2278_v6 }
 0x49c   : > { %v1671_v13 = vpop.permute.xlu1 %1670 }
 0x49d   : > { %v1675_v10 = vpop.permute.xlu0 %1674 }
 0x49e   : > { %v1679_v39 = vsel %vm1678_vm4, %v1671_v13, %v1675_v10  ;;  %v1681_v2 = vsel %vm1678_vm4, %v1675_v10, %v1671_v13  ;;  %vm1757_vm4 = vcmp.eq.s32.totalorder %v2997_v56, 1 }
 0x49f   : > { %v1708_v43 = vsel %vm1635_vm12, %v1679_v39, 0.0  ;;  %v1709_v20 = vsel %vm3028_vm14, %v1681_v2, 0.0 }
 0x4a0   : > { %v1712_v59 = vadd.f32 %v1708_v43, %v1637_v47  ;;  %v1713_v23 = vadd.f32 %v1709_v20, %v1667_v62 }
 0x4a4   : > { %v1717_v26 = vpop.permute.xlu1 %1716 }
 0x4a5   : > { %v1721_v63 = vpop.permute.xlu0 %1720 }
 0x4a6   : > { %v1727_v58 = vsel %vm1724_vm9, %v1721_v63, %v1717_v26  ;;  %v1725_v46 = vsel %vm1724_vm9, %v1717_v26, %v1721_v63  ;;  %vm1850_vm9 = vcmp.eq.s32.totalorder %v1845_v12, 1 }
 0x4a7   : > { %v1731_v51 = vsel %vm1729_vm13, %v1727_v58, 0.0  ;;  %v1732_v14 = vsel %vm1730_vm8, %v1725_v46, 0.0 }
 0x4a8   : > { %v1735_v24 = vadd.f32 %v1731_v51, %v1712_v59  ;;  %v1736_v4 = vadd.f32 %v1732_v14, %v1713_v23 }
 0x4aa   : > { %v1739_v29 = vadd.f32 %v1735_v24, %v2984_v48  ;;  %v1740_v27 = vadd.f32 %v1736_v4, %v2986_v3 }
 0x4b4   : > { %v1744_v36 = vpop.permute.xlu1 %1743 }
 0x4b5   : > { %v1748_v40 = vpop.permute.xlu0 %1747 }
 0x4b6   : > { %v1752_v5 = vsel %vm1751_vm10, %v1744_v36, %v1748_v40  ;;  %v1754_v45 = vsel %vm1751_vm10, %v1748_v40, %v1744_v36 }
 0x4b7   : > { %v1758_v61 = vsel %vm1756_vm2, %v1752_v5, 0.0  ;;  %v1759_v16 = vsel %vm1757_vm4, %v1754_v45, 0.0 }
 0x4b8   : > { %v1762_v0 = vadd.f32 %v1758_v61, %v1739_v29  ;;  %v1763_v48 = vadd.f32 %v1759_v16, %v1740_v27 }
 0x4bc   : > { %v1767_v9 = vpop.permute.xlu1 %1766 }
 0x4bd   : > { %v1771_v57 = vpop.permute.xlu0 %1770 }
 0x4be   : > { %v1777_v50 = vsel %vm1774_vm1, %v1771_v57, %v1767_v9  ;;  %v1775_v21 = vsel %vm1774_vm1, %v1767_v9, %v1771_v57 }
 0x4bf   : > { %v1793_v60 = vsel %vm1791_vm7, %v1777_v50, 0.0  ;;  %v1794_v49 = vsel %vm1635_vm12, %v1775_v21, 0.0 }
 0x4c0   : > { %v1797_v30 = vadd.f32 %v1793_v60, %v1762_v0  ;;  %v1798_v8 = vadd.f32 %v1794_v49, %v1763_v48 }
 0x4c4   : > { %v1802_v15 = vpop.permute.xlu0 %1801 }
 0x4c5   : > { %v1806_v37 = vpop.permute.xlu1 %1805 }
 0x4c6   : > { %v1811_v33 = vsel %vm1595_vm6, %v1806_v37, %v1802_v15 }
 0x4c7   : > { %v1817_v56 = vsel %vm1595_vm6, %v1811_v33, 0.0 }
 0x4c8   : > { %v1821_v6 = vadd.f32 %v1817_v56, %v1797_v30 }
 0x4cc   : > { %v1826_v34 = vpop.permute.xlu0 %1825 }
 0x4cd   : > { %v1830_v32 = vpop.permute.xlu1 %1829 }
 0x4ce   : > { %v1834_v7 = vsel %vm1833_vm15, %v1826_v34, %v1830_v32  ;;  %v1836_v13 = vsel %vm1833_vm15, %v1830_v32, %v1826_v34 }
 0x4cf   : > { %v1852_v3 = vsel %vm1850_vm9, %v1836_v13, 0.0  ;;  %v1853_v10 = vsel %vm1635_vm12, %v1834_v7, 0.0 }
 0x4d0   : > { %v1856_v41 = vadd.f32 %v1852_v3, %v1821_v6  ;;  %v1857_v54 = vadd.f32 %v1853_v10, %v1798_v8 }
 0x4d2   : > { %v1872_v22 = vadd.f32 %v2992_v28, %v1856_v41  ;;  %v1873_v11 = vadd.f32 %v2992_v28, %v1857_v54 }
 0x4d4   : > { %vm1876_vm6 = vcmp.ge.f32.partialorder %v1872_v22, 0.0  ;;  %vm1877_vm11 = vcmp.ge.f32.partialorder %v1873_v11, 0.0  ;;  %v1880_v53 = vmul.f32 0.01, %v1872_v22  ;;  %v1881_v26 = vmul.f32 0.01, %v1873_v11 }
 0x4d6   : > { %v1884_v63 = vsel %vm1876_vm6, %v1872_v22, %v1880_v53  ;;  %v1885_v19 = vsel %vm1877_vm11, %v1873_v11, %v1881_v26 }
 0x4d7   : > { %v1890_v39 = vrot.slane %v1884_v63, 6  ;;  %v1891_v25 = vrot.slane %v1885_v19, 6 }
 0x4d9   : > { %1894 = vst [vmem:[%s2183_s13 + $0x10] sm:$0x1c] %v1890_v39  ;;  %1895 = vst [vmem:[%s2183_s13 + $0x18] sm:$0x1c] %v1891_v25 }
 0x4da PF: > { %s18_s27 = sadd.s32 1, %s2093_s27  }
 0x4db   : > { %p15_p4 = scmp.ge.s32.totalorder %s18_s27, 4  }
 0x4dd   :  { %17 = sbr.rel (!%p15_p4) target bundleno = 1 (0x1), region = 82 }

</bundles_post_ra>
